<compile_context>
chip_gen: v7x
topology: tpu7x:2x2x1
jax: 0.10.0
libtpu: 0.0.40
codegen_flags: <defaults>
</compile_context>

<pallas_src>
import jax
import jax.numpy as jnp
from jax import lax
from jax.experimental import pallas as pl
from jax.experimental.pallas import tpu as pltpu


def _bilstm_kernel(x_ref, wih_ref, whh_ref, b_ref, h0_ref, c0_ref,
                   out_ref, hn_ref, cn_ref, h_sc, c_sc):
    d = pl.program_id(0)            # 0 = forward direction, 1 = backward
    tc = pl.program_id(1)           # time-chunk index (chunks are walked in
                                    # reverse for d == 1 via the index_maps)
    n_chunks = pl.num_programs(1)

    B = hn_ref.shape[1]
    H = hn_ref.shape[2]
    Tc = x_ref.shape[0] // B        # timesteps in this chunk (static)

    wih = wih_ref[0]                # (D, 4H) bf16, gate cols [i, f, o, g]
    whh = whh_ref[0]                # (H, 4H) bf16
    b = b_ref[0]                    # (1, 4H) f32 (b_ih + b_hh)

    # ---- initialise the recurrent carry at the first chunk of a direction ---
    @pl.when(tc == 0)
    def _():
        h_sc[...] = h0_ref[0]
        c_sc[...] = c0_ref[0]

    # ---- hoisted input projection: ONE MXU matmul for the whole chunk ------
    gx = jnp.dot(x_ref[...], wih,
                 preferred_element_type=jnp.float32) + b      # (Tc*B, 4H) f32

    def run_chunk(forward):
        h = h_sc[...]
        c = c_sc[...]
        hs = [None] * Tc
        for t in range(Tc):                       # static, bounded unroll (=Tc)
            row = t if forward else Tc - 1 - t    # STATIC local time index
            gates = gx[row * B:(row + 1) * B, :] + jnp.dot(
                h.astype(jnp.bfloat16), whh,
                preferred_element_type=jnp.float32)
            # gate order [i, f, o, g]: sigmoid on 3H cols, tanh on H cols only
            sg = jax.nn.sigmoid(gates[:, :3 * H])
            gg = jnp.tanh(gates[:, 3 * H:])
            c = sg[:, H:2 * H] * c + sg[:, 0:H] * gg
            h = sg[:, 2 * H:3 * H] * jnp.tanh(c)
            hs[row] = h
        # single lane/sublane-dense store of the whole chunk output
        out_ref[0] = jnp.concatenate(hs, axis=0)
        h_sc[...] = h
        c_sc[...] = c

    @pl.when(d == 0)
    def _():
        run_chunk(True)

    @pl.when(d != 0)
    def _():
        run_chunk(False)

    # ---- final states after the last chunk of each direction ---------------
    @pl.when(tc == n_chunks - 1)
    def _():
        hn_ref[0] = h_sc[...]
        cn_ref[0] = c_sc[...]


def make_params(num_vocab, input_size, hidden_size, key):
    """Torch-style raw params + one-time kernel-ready preparation."""
    D, H = input_size, hidden_size
    keys = jax.random.split(key, 10)
    k = 1.0 / (H ** 0.5)

    def u(kk, shape):
        return jax.random.uniform(kk, shape, jnp.float32, -k, k)

    embedding = jax.random.normal(keys[0], (num_vocab, D), jnp.float32)
    raw = {                                       # PyTorch layout, gate order [i,f,g,o]
        "w_ih": [u(keys[1], (4 * H, D)), u(keys[2], (4 * H, D))],
        "w_hh": [u(keys[3], (4 * H, H)), u(keys[4], (4 * H, H))],
        "b_ih": [u(keys[5], (4 * H,)), u(keys[6], (4 * H,))],
        "b_hh": [u(keys[7], (4 * H,)), u(keys[8], (4 * H,))],
    }
    # learned initial states (h_0, c_0, h_1, c_1), normal(0, 1e-4), each (1, H)
    hc = jax.random.normal(keys[9], (4, 1, H), jnp.float32) * 1e-4

    # --- one-time kernel preparation: gate reorder [i,f,g,o] -> [i,f,o,g],
    #     transpose to (D,4H)/(H,4H), fuse biases, pre-cast weights to bf16 ---
    perm = jnp.concatenate([jnp.arange(0, 2 * H),
                            jnp.arange(3 * H, 4 * H),
                            jnp.arange(2 * H, 3 * H)])
    wih = jnp.stack([raw["w_ih"][d][perm].T for d in range(2)]).astype(jnp.bfloat16)
    whh = jnp.stack([raw["w_hh"][d][perm].T for d in range(2)]).astype(jnp.bfloat16)
    bias = jnp.stack([(raw["b_ih"][d] + raw["b_hh"][d])[perm].reshape(1, 4 * H)
                      for d in range(2)])                       # (2, 1, 4H) f32

    return {
        "embedding": embedding, "wih": wih, "whh": whh, "bias": bias,
        "h_0": hc[0], "c_0": hc[1], "h_1": hc[2], "c_1": hc[3],
        "hidden_size": H, "raw": raw,
    }


def bi_multi_layer_lstm_encoder(X, params, *, time_chunk=8):
    """X = (X_data, X_len); X_data int32 (T, B), X_len length-B sequence."""
    X_data, X_len = X
    B = len(X_len)
    emb = params["embedding"][X_data]            # (T, B, D) f32 embedding gather
    T, _, D = emb.shape
    H = params["hidden_size"]

    # Pick a time-chunk that divides T; prefer Tc*B multiple of 16 so the bf16
    # x blocks stay aligned to the packed sublane tile.
    Tc = T
    for cand in range(min(time_chunk, T), 0, -1):
        if T % cand == 0 and (cand * B) % 16 == 0:
            Tc = cand
            break
    nc = T // Tc

    # lane/sublane-dense bf16 input, reshaped ONCE in the wrapper
    x = emb.astype(jnp.bfloat16).reshape(T * B, D)              # (T*B, D) bf16

    # tile learned initial states over batch (intent of torch.cat([h_0]*B))
    h_init = jnp.stack([jnp.tile(params["h_0"], (B, 1)),
                        jnp.tile(params["h_1"], (B, 1))])       # (2, B, H)
    c_init = jnp.stack([jnp.tile(params["c_0"], (B, 1)),
                        jnp.tile(params["c_1"], (B, 1))])       # (2, B, H)

    # time chunks walk forward for d=0 and backward for d=1
    def x_map(d, c):
        return (c + d * (nc - 1 - 2 * c), 0)

    def out_map(d, c):
        return (d, c + d * (nc - 1 - 2 * c), 0)

    flops = 4 * T * B * 4 * H * (D + H)           # input proj + recurrent, 2 dirs
    transcendentals = 2 * T * B * 5 * H           # sigmoid 3H + tanh H + tanh H
    bytes_accessed = int(x.size) * 2 + int(params["wih"].size) * 2 \
        + int(params["whh"].size) * 2 + int(params["bias"].size) * 4 \
        + 2 * T * B * H * 4 + 4 * 2 * B * H * 4

    grid_spec = pltpu.PrefetchScalarGridSpec(
        num_scalar_prefetch=0,
        grid=(2, nc),
        in_specs=[
            pl.BlockSpec((Tc * B, D), x_map),                      # x chunk (bf16)
            pl.BlockSpec((1, D, 4 * H), lambda d, c: (d, 0, 0)),   # W_ih (resident)
            pl.BlockSpec((1, H, 4 * H), lambda d, c: (d, 0, 0)),   # W_hh (resident)
            pl.BlockSpec((1, 1, 4 * H), lambda d, c: (d, 0, 0)),   # bias
            pl.BlockSpec((1, B, H), lambda d, c: (d, 0, 0)),       # h0
            pl.BlockSpec((1, B, H), lambda d, c: (d, 0, 0)),       # c0
        ],
        out_specs=[
            pl.BlockSpec((1, Tc * B, H), out_map),                 # per-dir output
            pl.BlockSpec((1, B, H), lambda d, c: (d, 0, 0)),       # h_n
            pl.BlockSpec((1, B, H), lambda d, c: (d, 0, 0)),       # c_n
        ],
        scratch_shapes=[
            pltpu.VMEM((B, H), jnp.float32),    # h carry across time chunks
            pltpu.VMEM((B, H), jnp.float32),    # c carry across time chunks
        ],
    )

    out_dirs, h_n, c_n = pl.pallas_call(
        _bilstm_kernel,
        out_shape=(
            jax.ShapeDtypeStruct((2, T * B, H), jnp.float32),
            jax.ShapeDtypeStruct((2, B, H), jnp.float32),
            jax.ShapeDtypeStruct((2, B, H), jnp.float32),
        ),
        grid_spec=grid_spec,
        compiler_params=pltpu.CompilerParams(
            dimension_semantics=("parallel", "arbitrary")),
        cost_estimate=pl.CostEstimate(flops=flops,
                                      transcendentals=transcendentals,
                                      bytes_accessed=bytes_accessed),
    )(x, params["wih"], params["whh"], params["bias"], h_init, c_init)

    out_dirs = out_dirs.reshape(2, T, B, H)
    output = jnp.concatenate([out_dirs[0], out_dirs[1]], axis=-1)   # (T, B, 2H)
    h_n = h_n.reshape(1, 2, B, H)    # (num_layers=1, 2, B, H)
    c_n = c_n.reshape(1, 2, B, H)
    # NOTE: dropout_layer is defined in the torch module but never applied in
    #       forward; X_len only determines batch size (no packing/masking).
    return output, h_n, c_n


def _reference_forward(X_data, X_len, params):
    """Pure-JAX f32 reference with PyTorch gate order [i, f, g, o]."""
    B = len(X_len)
    emb = params["embedding"][X_data]
    T = emb.shape[0]
    H = params["hidden_size"]
    raw = params["raw"]
    outs, h_fin, c_fin = [], [], []
    for d in range(2):
        w_ih, w_hh = raw["w_ih"][d], raw["w_hh"][d]
        b = raw["b_ih"][d] + raw["b_hh"][d]
        h = jnp.tile(params["h_0"] if d == 0 else params["h_1"], (B, 1))
        c = jnp.tile(params["c_0"] if d == 0 else params["c_1"], (B, 1))
        order = range(T) if d == 0 else range(T - 1, -1, -1)
        out = [None] * T
        for t in order:
            g = emb[t] @ w_ih.T + h @ w_hh.T + b
            i = jax.nn.sigmoid(g[:, :H])
            f = jax.nn.sigmoid(g[:, H:2 * H])
            gg = jnp.tanh(g[:, 2 * H:3 * H])
            o = jax.nn.sigmoid(g[:, 3 * H:])
            c = f * c + i * gg
            h = o * jnp.tanh(c)
            out[t] = h
        outs.append(jnp.stack(out))
        h_fin.append(h)
        c_fin.append(c)
    output = jnp.concatenate(outs, axis=-1)
    h_n = jnp.stack(h_fin).reshape(1, 2, B, H)
    c_n = jnp.stack(c_fin).reshape(1, 2, B, H)
    return output, h_n, c_n


if __name__ == "__main__":
    num_vocab, D, H = 20, 32, 32
    T, B = 16, 2

    key = jax.random.PRNGKey(0)
    k_param, k_data = jax.random.split(key)
    params = make_params(num_vocab, D, H, k_param)

    X_data = jax.random.randint(k_data, (T, B), 0, num_vocab, dtype=jnp.int32)
    X_len = [T, T]   # lengths only determine batch size in the torch forward

    output, h_n, c_n = bi_multi_layer_lstm_encoder((X_data, X_len), params,
                                                   time_chunk=8)
    jax.block_until_ready((output, h_n, c_n))

    assert output.shape == (T, B, 2 * H)
    assert h_n.shape == (1, 2, B, H)
    assert c_n.shape == (1, 2, B, H)

    # correctness vs. f32 reference (bf16 MXU inputs -> loose tolerance)
    ref_out, ref_h, ref_c = _reference_forward(X_data, X_len, params)
    assert float(jnp.max(jnp.abs(output - ref_out))) < 5e-2
    assert float(jnp.max(jnp.abs(h_n - ref_h))) < 5e-2
    assert float(jnp.max(jnp.abs(c_n - ref_c))) < 1e-1

    print("KERNEL_OK")
</pallas_src>

<mosaic_0001>
module attributes {stable_mosaic.version = 11 : i64} {
  func.func @_bilstm_kernel(%arg0: i32, %arg1: i32, %arg2: memref<16x32xbf16, #tpu.memory_space<vmem>>, %arg3: memref<1x32x128xbf16, #tpu.memory_space<vmem>>, %arg4: memref<1x32x128xbf16, #tpu.memory_space<vmem>>, %arg5: memref<1x1x128xf32, #tpu.memory_space<vmem>>, %arg6: memref<1x2x32xf32, #tpu.memory_space<vmem>>, %arg7: memref<1x2x32xf32, #tpu.memory_space<vmem>>, %arg8: memref<1x16x32xf32, #tpu.memory_space<vmem>>, %arg9: memref<1x2x32xf32, #tpu.memory_space<vmem>>, %arg10: memref<1x2x32xf32, #tpu.memory_space<vmem>>, %arg11: memref<2x32xf32, #tpu.memory_space<vmem>>, %arg12: memref<2x32xf32, #tpu.memory_space<vmem>>) attributes {dimension_semantics = [#tpu.dimension_semantics<parallel>, #tpu.dimension_semantics<arbitrary>], iteration_bounds = array<i64: 2, 2>, scalar_prefetch = 0 : i64, scratch_operands = 2 : i64, tpu.core_type = #tpu.core_type<tc>, window_params = [{transform_indices = @transform_0, window_bounds = array<i64: 16, 32>}, {transform_indices = @transform_1, window_bounds = array<i64: 1, 32, 128>}, {transform_indices = @transform_2, window_bounds = array<i64: 1, 32, 128>}, {transform_indices = @transform_3, window_bounds = array<i64: 1, 1, 128>}, {transform_indices = @transform_4, window_bounds = array<i64: 1, 2, 32>}, {transform_indices = @transform_5, window_bounds = array<i64: 1, 2, 32>}, {transform_indices = @transform_6, window_bounds = array<i64: 1, 16, 32>}, {transform_indices = @transform_7, window_bounds = array<i64: 1, 2, 32>}, {transform_indices = @transform_8, window_bounds = array<i64: 1, 2, 32>}]} {
    %c0 = arith.constant 0 : index
    %c0_0 = arith.constant 0 : index
    %c0_1 = arith.constant 0 : index
    %0 = vector.load %arg3[%c0, %c0_0, %c0_1] : memref<1x32x128xbf16, #tpu.memory_space<vmem>>, vector<1x32x128xbf16>
    %1 = vector.shape_cast %0 : vector<1x32x128xbf16> to vector<32x128xbf16>
    %c0_2 = arith.constant 0 : index
    %c0_3 = arith.constant 0 : index
    %c0_4 = arith.constant 0 : index
    %2 = vector.load %arg4[%c0_2, %c0_3, %c0_4] : memref<1x32x128xbf16, #tpu.memory_space<vmem>>, vector<1x32x128xbf16>
    %3 = vector.shape_cast %2 : vector<1x32x128xbf16> to vector<32x128xbf16>
    %c0_5 = arith.constant 0 : index
    %c0_6 = arith.constant 0 : index
    %c0_7 = arith.constant 0 : index
    %4 = vector.load %arg5[%c0_5, %c0_6, %c0_7] : memref<1x1x128xf32, #tpu.memory_space<vmem>>, vector<1x1x128xf32>
    %5 = vector.shape_cast %4 : vector<1x1x128xf32> to vector<1x128xf32>
    %c0_i32 = arith.constant 0 : i32
    %6 = arith.cmpi eq, %arg1, %c0_i32 : i32
    %7 = arith.extui %6 : i1 to i32
    %c0_i32_8 = arith.constant 0 : i32
    %8 = arith.cmpi ne, %7, %c0_i32_8 : i32
    scf.if %8 {
      %c0_16 = arith.constant 0 : index
      %c0_17 = arith.constant 0 : index
      %c0_18 = arith.constant 0 : index
      %22 = vector.load %arg6[%c0_16, %c0_17, %c0_18] : memref<1x2x32xf32, #tpu.memory_space<vmem>>, vector<1x2x32xf32>
      %23 = vector.shape_cast %22 : vector<1x2x32xf32> to vector<2x32xf32>
      %c0_19 = arith.constant 0 : index
      %c0_20 = arith.constant 0 : index
      %24 = vector.load %arg11[%c0_19, %c0_20] : memref<2x32xf32, #tpu.memory_space<vmem>>, vector<2x32xf32>
      tpu.vector_store %arg11[%c0_19, %c0_20], %23 {strides = array<i32>} : memref<2x32xf32, #tpu.memory_space<vmem>>, vector<2x32xf32>,
      %c0_21 = arith.constant 0 : index
      %c0_22 = arith.constant 0 : index
      %c0_23 = arith.constant 0 : index
      %25 = vector.load %arg7[%c0_21, %c0_22, %c0_23] : memref<1x2x32xf32, #tpu.memory_space<vmem>>, vector<1x2x32xf32>
      %26 = vector.shape_cast %25 : vector<1x2x32xf32> to vector<2x32xf32>
      %c0_24 = arith.constant 0 : index
      %c0_25 = arith.constant 0 : index
      %27 = vector.load %arg12[%c0_24, %c0_25] : memref<2x32xf32, #tpu.memory_space<vmem>>, vector<2x32xf32>
      tpu.vector_store %arg12[%c0_24, %c0_25], %26 {strides = array<i32>} : memref<2x32xf32, #tpu.memory_space<vmem>>, vector<2x32xf32>,
    } else {
    }
    %c0_9 = arith.constant 0 : index
    %c0_10 = arith.constant 0 : index
    %9 = vector.load %arg2[%c0_9, %c0_10] : memref<16x32xbf16, #tpu.memory_space<vmem>>, vector<16x32xbf16>
    %cst = arith.constant dense<0.000000e+00> : vector<16x128xf32>
    %10 = tpu.matmul %9, %1, %cst {dimension_numbers = #tpu.dot_dimension_numbers<[1], [0], [0], [1], [0, 0, 1, 1], [], []>} : vector<16x32xbf16>, vector<32x128xbf16>, vector<16x128xf32> -> vector<16x128xf32>
    %11 = vector.broadcast %5 : vector<1x128xf32> to vector<16x128xf32>
    %12 = arith.addf %10, %11 : vector<16x128xf32>
    %c0_i32_11 = arith.constant 0 : i32
    %13 = arith.cmpi eq, %arg0, %c0_i32_11 : i32
    %14 = arith.extui %13 : i1 to i32
    %c0_i32_12 = arith.constant 0 : i32
    %15 = arith.cmpi ne, %14, %c0_i32_12 : i32
    scf.if %15 {
      %c0_16 = arith.constant 0 : index
      %c0_17 = arith.constant 0 : index
      %22 = vector.load %arg11[%c0_16, %c0_17] : memref<2x32xf32, #tpu.memory_space<vmem>>, vector<2x32xf32>
      %c0_18 = arith.constant 0 : index
      %c0_19 = arith.constant 0 : index
      %23 = vector.load %arg12[%c0_18, %c0_19] : memref<2x32xf32, #tpu.memory_space<vmem>>, vector<2x32xf32>
      %24 = vector.extract_strided_slice %12 {offsets = [0, 0], sizes = [2, 128], strides = [1, 1]} : vector<16x128xf32> to vector<2x128xf32>
      %25 = arith.truncf %22 : vector<2x32xf32> to vector<2x32xbf16>
      %cst_20 = arith.constant dense<0.000000e+00> : vector<2x128xf32>
      %26 = tpu.matmul %25, %3, %cst_20 {dimension_numbers = #tpu.dot_dimension_numbers<[1], [0], [0], [1], [0, 0, 1, 1], [], []>} : vector<2x32xbf16>, vector<32x128xbf16>, vector<2x128xf32> -> vector<2x128xf32>
      %27 = arith.addf %24, %26 : vector<2x128xf32>
      %28 = vector.extract_strided_slice %27 {offsets = [0, 0], sizes = [2, 96], strides = [1, 1]} : vector<2x128xf32> to vector<2x96xf32>
      %29 = arith.negf %28 : vector<2x96xf32>
      %30 = math.exp %29 : vector<2x96xf32>
      %cst_21 = arith.constant 1.000000e+00 : f32
      %31 = vector.broadcast %cst_21 : f32 to vector<2x96xf32>
      %32 = arith.addf %31, %30 : vector<2x96xf32>
      %33 = arith.divf %31, %32 : vector<2x96xf32>
      %34 = vector.extract_strided_slice %27 {offsets = [0, 96], sizes = [2, 32], strides = [1, 1]} : vector<2x128xf32> to vector<2x32xf32>
      %35 = math.tanh %34 : vector<2x32xf32>
      %36 = vector.extract_strided_slice %33 {offsets = [0, 32], sizes = [2, 32], strides = [1, 1]} : vector<2x96xf32> to vector<2x32xf32>
      %37 = arith.mulf %36, %23 : vector<2x32xf32>
      %38 = vector.extract_strided_slice %33 {offsets = [0, 0], sizes = [2, 32], strides = [1, 1]} : vector<2x96xf32> to vector<2x32xf32>
      %39 = arith.mulf %38, %35 : vector<2x32xf32>
      %40 = arith.addf %37, %39 : vector<2x32xf32>
      %41 = vector.extract_strided_slice %33 {offsets = [0, 64], sizes = [2, 32], strides = [1, 1]} : vector<2x96xf32> to vector<2x32xf32>
      %42 = math.tanh %40 : vector<2x32xf32>
      %43 = arith.mulf %41, %42 : vector<2x32xf32>
      %44 = vector.extract_strided_slice %12 {offsets = [2, 0], sizes = [2, 128], strides = [1, 1]} : vector<16x128xf32> to vector<2x128xf32>
      %45 = arith.truncf %43 : vector<2x32xf32> to vector<2x32xbf16>
      %cst_22 = arith.constant dense<0.000000e+00> : vector<2x128xf32>
      %46 = tpu.matmul %45, %3, %cst_22 {dimension_numbers = #tpu.dot_dimension_numbers<[1], [0], [0], [1], [0, 0, 1, 1], [], []>} : vector<2x32xbf16>, vector<32x128xbf16>, vector<2x128xf32> -> vector<2x128xf32>
      %47 = arith.addf %44, %46 : vector<2x128xf32>
      %48 = vector.extract_strided_slice %47 {offsets = [0, 0], sizes = [2, 96], strides = [1, 1]} : vector<2x128xf32> to vector<2x96xf32>
      %49 = arith.negf %48 : vector<2x96xf32>
      %50 = math.exp %49 : vector<2x96xf32>
      %cst_23 = arith.constant 1.000000e+00 : f32
      %51 = vector.broadcast %cst_23 : f32 to vector<2x96xf32>
      %52 = arith.addf %51, %50 : vector<2x96xf32>
      %53 = arith.divf %51, %52 : vector<2x96xf32>
      %54 = vector.extract_strided_slice %47 {offsets = [0, 96], sizes = [2, 32], strides = [1, 1]} : vector<2x128xf32> to vector<2x32xf32>
      %55 = math.tanh %54 : vector<2x32xf32>
      %56 = vector.extract_strided_slice %53 {offsets = [0, 32], sizes = [2, 32], strides = [1, 1]} : vector<2x96xf32> to vector<2x32xf32>
      %57 = arith.mulf %56, %40 : vector<2x32xf32>
      %58 = vector.extract_strided_slice %53 {offsets = [0, 0], sizes = [2, 32], strides = [1, 1]} : vector<2x96xf32> to vector<2x32xf32>
      %59 = arith.mulf %58, %55 : vector<2x32xf32>
      %60 = arith.addf %57, %59 : vector<2x32xf32>
      %61 = vector.extract_strided_slice %53 {offsets = [0, 64], sizes = [2, 32], strides = [1, 1]} : vector<2x96xf32> to vector<2x32xf32>
      %62 = math.tanh %60 : vector<2x32xf32>
      %63 = arith.mulf %61, %62 : vector<2x32xf32>
      %64 = vector.extract_strided_slice %12 {offsets = [4, 0], sizes = [2, 128], strides = [1, 1]} : vector<16x128xf32> to vector<2x128xf32>
      %65 = arith.truncf %63 : vector<2x32xf32> to vector<2x32xbf16>
      %cst_24 = arith.constant dense<0.000000e+00> : vector<2x128xf32>
      %66 = tpu.matmul %65, %3, %cst_24 {dimension_numbers = #tpu.dot_dimension_numbers<[1], [0], [0], [1], [0, 0, 1, 1], [], []>} : vector<2x32xbf16>, vector<32x128xbf16>, vector<2x128xf32> -> vector<2x128xf32>
      %67 = arith.addf %64, %66 : vector<2x128xf32>
      %68 = vector.extract_strided_slice %67 {offsets = [0, 0], sizes = [2, 96], strides = [1, 1]} : vector<2x128xf32> to vector<2x96xf32>
      %69 = arith.negf %68 : vector<2x96xf32>
      %70 = math.exp %69 : vector<2x96xf32>
      %cst_25 = arith.constant 1.000000e+00 : f32
      %71 = vector.broadcast %cst_25 : f32 to vector<2x96xf32>
      %72 = arith.addf %71, %70 : vector<2x96xf32>
      %73 = arith.divf %71, %72 : vector<2x96xf32>
      %74 = vector.extract_strided_slice %67 {offsets = [0, 96], sizes = [2, 32], strides = [1, 1]} : vector<2x128xf32> to vector<2x32xf32>
      %75 = math.tanh %74 : vector<2x32xf32>
      %76 = vector.extract_strided_slice %73 {offsets = [0, 32], sizes = [2, 32], strides = [1, 1]} : vector<2x96xf32> to vector<2x32xf32>
      %77 = arith.mulf %76, %60 : vector<2x32xf32>
      %78 = vector.extract_strided_slice %73 {offsets = [0, 0], sizes = [2, 32], strides = [1, 1]} : vector<2x96xf32> to vector<2x32xf32>
      %79 = arith.mulf %78, %75 : vector<2x32xf32>
      %80 = arith.addf %77, %79 : vector<2x32xf32>
      %81 = vector.extract_strided_slice %73 {offsets = [0, 64], sizes = [2, 32], strides = [1, 1]} : vector<2x96xf32> to vector<2x32xf32>
      %82 = math.tanh %80 : vector<2x32xf32>
      %83 = arith.mulf %81, %82 : vector<2x32xf32>
      %84 = vector.extract_strided_slice %12 {offsets = [6, 0], sizes = [2, 128], strides = [1, 1]} : vector<16x128xf32> to vector<2x128xf32>
      %85 = arith.truncf %83 : vector<2x32xf32> to vector<2x32xbf16>
      %cst_26 = arith.constant dense<0.000000e+00> : vector<2x128xf32>
      %86 = tpu.matmul %85, %3, %cst_26 {dimension_numbers = #tpu.dot_dimension_numbers<[1], [0], [0], [1], [0, 0, 1, 1], [], []>} : vector<2x32xbf16>, vector<32x128xbf16>, vector<2x128xf32> -> vector<2x128xf32>
      %87 = arith.addf %84, %86 : vector<2x128xf32>
      %88 = vector.extract_strided_slice %87 {offsets = [0, 0], sizes = [2, 96], strides = [1, 1]} : vector<2x128xf32> to vector<2x96xf32>
      %89 = arith.negf %88 : vector<2x96xf32>
      %90 = math.exp %89 : vector<2x96xf32>
      %cst_27 = arith.constant 1.000000e+00 : f32
      %91 = vector.broadcast %cst_27 : f32 to vector<2x96xf32>
      %92 = arith.addf %91, %90 : vector<2x96xf32>
      %93 = arith.divf %91, %92 : vector<2x96xf32>
      %94 = vector.extract_strided_slice %87 {offsets = [0, 96], sizes = [2, 32], strides = [1, 1]} : vector<2x128xf32> to vector<2x32xf32>
      %95 = math.tanh %94 : vector<2x32xf32>
      %96 = vector.extract_strided_slice %93 {offsets = [0, 32], sizes = [2, 32], strides = [1, 1]} : vector<2x96xf32> to vector<2x32xf32>
      %97 = arith.mulf %96, %80 : vector<2x32xf32>
      %98 = vector.extract_strided_slice %93 {offsets = [0, 0], sizes = [2, 32], strides = [1, 1]} : vector<2x96xf32> to vector<2x32xf32>
      %99 = arith.mulf %98, %95 : vector<2x32xf32>
      %100 = arith.addf %97, %99 : vector<2x32xf32>
      %101 = vector.extract_strided_slice %93 {offsets = [0, 64], sizes = [2, 32], strides = [1, 1]} : vector<2x96xf32> to vector<2x32xf32>
      %102 = math.tanh %100 : vector<2x32xf32>
      %103 = arith.mulf %101, %102 : vector<2x32xf32>
      %104 = vector.extract_strided_slice %12 {offsets = [8, 0], sizes = [2, 128], strides = [1, 1]} : vector<16x128xf32> to vector<2x128xf32>
      %105 = arith.truncf %103 : vector<2x32xf32> to vector<2x32xbf16>
      %cst_28 = arith.constant dense<0.000000e+00> : vector<2x128xf32>
      %106 = tpu.matmul %105, %3, %cst_28 {dimension_numbers = #tpu.dot_dimension_numbers<[1], [0], [0], [1], [0, 0, 1, 1], [], []>} : vector<2x32xbf16>, vector<32x128xbf16>, vector<2x128xf32> -> vector<2x128xf32>
      %107 = arith.addf %104, %106 : vector<2x128xf32>
      %108 = vector.extract_strided_slice %107 {offsets = [0, 0], sizes = [2, 96], strides = [1, 1]} : vector<2x128xf32> to vector<2x96xf32>
      %109 = arith.negf %108 : vector<2x96xf32>
      %110 = math.exp %109 : vector<2x96xf32>
      %cst_29 = arith.constant 1.000000e+00 : f32
      %111 = vector.broadcast %cst_29 : f32 to vector<2x96xf32>
      %112 = arith.addf %111, %110 : vector<2x96xf32>
      %113 = arith.divf %111, %112 : vector<2x96xf32>
      %114 = vector.extract_strided_slice %107 {offsets = [0, 96], sizes = [2, 32], strides = [1, 1]} : vector<2x128xf32> to vector<2x32xf32>
      %115 = math.tanh %114 : vector<2x32xf32>
      %116 = vector.extract_strided_slice %113 {offsets = [0, 32], sizes = [2, 32], strides = [1, 1]} : vector<2x96xf32> to vector<2x32xf32>
      %117 = arith.mulf %116, %100 : vector<2x32xf32>
      %118 = vector.extract_strided_slice %113 {offsets = [0, 0], sizes = [2, 32], strides = [1, 1]} : vector<2x96xf32> to vector<2x32xf32>
      %119 = arith.mulf %118, %115 : vector<2x32xf32>
      %120 = arith.addf %117, %119 : vector<2x32xf32>
      %121 = vector.extract_strided_slice %113 {offsets = [0, 64], sizes = [2, 32], strides = [1, 1]} : vector<2x96xf32> to vector<2x32xf32>
      %122 = math.tanh %120 : vector<2x32xf32>
      %123 = arith.mulf %121, %122 : vector<2x32xf32>
      %124 = vector.extract_strided_slice %12 {offsets = [10, 0], sizes = [2, 128], strides = [1, 1]} : vector<16x128xf32> to vector<2x128xf32>
      %125 = arith.truncf %123 : vector<2x32xf32> to vector<2x32xbf16>
      %cst_30 = arith.constant dense<0.000000e+00> : vector<2x128xf32>
      %126 = tpu.matmul %125, %3, %cst_30 {dimension_numbers = #tpu.dot_dimension_numbers<[1], [0], [0], [1], [0, 0, 1, 1], [], []>} : vector<2x32xbf16>, vector<32x128xbf16>, vector<2x128xf32> -> vector<2x128xf32>
      %127 = arith.addf %124, %126 : vector<2x128xf32>
      %128 = vector.extract_strided_slice %127 {offsets = [0, 0], sizes = [2, 96], strides = [1, 1]} : vector<2x128xf32> to vector<2x96xf32>
      %129 = arith.negf %128 : vector<2x96xf32>
      %130 = math.exp %129 : vector<2x96xf32>
      %cst_31 = arith.constant 1.000000e+00 : f32
      %131 = vector.broadcast %cst_31 : f32 to vector<2x96xf32>
      %132 = arith.addf %131, %130 : vector<2x96xf32>
      %133 = arith.divf %131, %132 : vector<2x96xf32>
      %134 = vector.extract_strided_slice %127 {offsets = [0, 96], sizes = [2, 32], strides = [1, 1]} : vector<2x128xf32> to vector<2x32xf32>
      %135 = math.tanh %134 : vector<2x32xf32>
      %136 = vector.extract_strided_slice %133 {offsets = [0, 32], sizes = [2, 32], strides = [1, 1]} : vector<2x96xf32> to vector<2x32xf32>
      %137 = arith.mulf %136, %120 : vector<2x32xf32>
      %138 = vector.extract_strided_slice %133 {offsets = [0, 0], sizes = [2, 32], strides = [1, 1]} : vector<2x96xf32> to vector<2x32xf32>
      %139 = arith.mulf %138, %135 : vector<2x32xf32>
      %140 = arith.addf %137, %139 : vector<2x32xf32>
      %141 = vector.extract_strided_slice %133 {offsets = [0, 64], sizes = [2, 32], strides = [1, 1]} : vector<2x96xf32> to vector<2x32xf32>
      %142 = math.tanh %140 : vector<2x32xf32>
      %143 = arith.mulf %141, %142 : vector<2x32xf32>
      %144 = vector.extract_strided_slice %12 {offsets = [12, 0], sizes = [2, 128], strides = [1, 1]} : vector<16x128xf32> to vector<2x128xf32>
      %145 = arith.truncf %143 : vector<2x32xf32> to vector<2x32xbf16>
      %cst_32 = arith.constant dense<0.000000e+00> : vector<2x128xf32>
      %146 = tpu.matmul %145, %3, %cst_32 {dimension_numbers = #tpu.dot_dimension_numbers<[1], [0], [0], [1], [0, 0, 1, 1], [], []>} : vector<2x32xbf16>, vector<32x128xbf16>, vector<2x128xf32> -> vector<2x128xf32>
      %147 = arith.addf %144, %146 : vector<2x128xf32>
      %148 = vector.extract_strided_slice %147 {offsets = [0, 0], sizes = [2, 96], strides = [1, 1]} : vector<2x128xf32> to vector<2x96xf32>
      %149 = arith.negf %148 : vector<2x96xf32>
      %150 = math.exp %149 : vector<2x96xf32>
      %cst_33 = arith.constant 1.000000e+00 : f32
      %151 = vector.broadcast %cst_33 : f32 to vector<2x96xf32>
      %152 = arith.addf %151, %150 : vector<2x96xf32>
      %153 = arith.divf %151, %152 : vector<2x96xf32>
      %154 = vector.extract_strided_slice %147 {offsets = [0, 96], sizes = [2, 32], strides = [1, 1]} : vector<2x128xf32> to vector<2x32xf32>
      %155 = math.tanh %154 : vector<2x32xf32>
      %156 = vector.extract_strided_slice %153 {offsets = [0, 32], sizes = [2, 32], strides = [1, 1]} : vector<2x96xf32> to vector<2x32xf32>
      %157 = arith.mulf %156, %140 : vector<2x32xf32>
      %158 = vector.extract_strided_slice %153 {offsets = [0, 0], sizes = [2, 32], strides = [1, 1]} : vector<2x96xf32> to vector<2x32xf32>
      %159 = arith.mulf %158, %155 : vector<2x32xf32>
      %160 = arith.addf %157, %159 : vector<2x32xf32>
      %161 = vector.extract_strided_slice %153 {offsets = [0, 64], sizes = [2, 32], strides = [1, 1]} : vector<2x96xf32> to vector<2x32xf32>
      %162 = math.tanh %160 : vector<2x32xf32>
      %163 = arith.mulf %161, %162 : vector<2x32xf32>
      %164 = vector.extract_strided_slice %12 {offsets = [14, 0], sizes = [2, 128], strides = [1, 1]} : vector<16x128xf32> to vector<2x128xf32>
      %165 = arith.truncf %163 : vector<2x32xf32> to vector<2x32xbf16>
      %cst_34 = arith.constant dense<0.000000e+00> : vector<2x128xf32>
      %166 = tpu.matmul %165, %3, %cst_34 {dimension_numbers = #tpu.dot_dimension_numbers<[1], [0], [0], [1], [0, 0, 1, 1], [], []>} : vector<2x32xbf16>, vector<32x128xbf16>, vector<2x128xf32> -> vector<2x128xf32>
      %167 = arith.addf %164, %166 : vector<2x128xf32>
      %168 = vector.extract_strided_slice %167 {offsets = [0, 0], sizes = [2, 96], strides = [1, 1]} : vector<2x128xf32> to vector<2x96xf32>
      %169 = arith.negf %168 : vector<2x96xf32>
      %170 = math.exp %169 : vector<2x96xf32>
      %cst_35 = arith.constant 1.000000e+00 : f32
      %171 = vector.broadcast %cst_35 : f32 to vector<2x96xf32>
      %172 = arith.addf %171, %170 : vector<2x96xf32>
      %173 = arith.divf %171, %172 : vector<2x96xf32>
      %174 = vector.extract_strided_slice %167 {offsets = [0, 96], sizes = [2, 32], strides = [1, 1]} : vector<2x128xf32> to vector<2x32xf32>
      %175 = math.tanh %174 : vector<2x32xf32>
      %176 = vector.extract_strided_slice %173 {offsets = [0, 32], sizes = [2, 32], strides = [1, 1]} : vector<2x96xf32> to vector<2x32xf32>
      %177 = arith.mulf %176, %160 : vector<2x32xf32>
      %178 = vector.extract_strided_slice %173 {offsets = [0, 0], sizes = [2, 32], strides = [1, 1]} : vector<2x96xf32> to vector<2x32xf32>
      %179 = arith.mulf %178, %175 : vector<2x32xf32>
      %180 = arith.addf %177, %179 : vector<2x32xf32>
      %181 = vector.extract_strided_slice %173 {offsets = [0, 64], sizes = [2, 32], strides = [1, 1]} : vector<2x96xf32> to vector<2x32xf32>
      %182 = math.tanh %180 : vector<2x32xf32>
      %183 = arith.mulf %181, %182 : vector<2x32xf32>
      %184 = tpu.concatenate %43, %63, %83, %103, %123, %143, %163, %183 in 0 : vector<2x32xf32>, vector<2x32xf32>, vector<2x32xf32>, vector<2x32xf32>, vector<2x32xf32>, vector<2x32xf32>, vector<2x32xf32>, vector<2x32xf32> -> vector<16x32xf32>
      %c0_36 = arith.constant 0 : index
      %c0_37 = arith.constant 0 : index
      %c0_38 = arith.constant 0 : index
      %185 = vector.load %arg8[%c0_36, %c0_37, %c0_38] : memref<1x16x32xf32, #tpu.memory_space<vmem>>, vector<1x16x32xf32>
      %186 = vector.shape_cast %185 : vector<1x16x32xf32> to vector<16x32xf32>
      %187 = vector.shape_cast %184 : vector<16x32xf32> to vector<1x16x32xf32>
      tpu.vector_store %arg8[%c0_36, %c0_37, %c0_38], %187 {strides = array<i32>} : memref<1x16x32xf32, #tpu.memory_space<vmem>>, vector<1x16x32xf32>,
      %c0_39 = arith.constant 0 : index
      %c0_40 = arith.constant 0 : index
      %188 = vector.load %arg11[%c0_39, %c0_40] : memref<2x32xf32, #tpu.memory_space<vmem>>, vector<2x32xf32>
      tpu.vector_store %arg11[%c0_39, %c0_40], %183 {strides = array<i32>} : memref<2x32xf32, #tpu.memory_space<vmem>>, vector<2x32xf32>,
      %c0_41 = arith.constant 0 : index
      %c0_42 = arith.constant 0 : index
      %189 = vector.load %arg12[%c0_41, %c0_42] : memref<2x32xf32, #tpu.memory_space<vmem>>, vector<2x32xf32>
      tpu.vector_store %arg12[%c0_41, %c0_42], %180 {strides = array<i32>} : memref<2x32xf32, #tpu.memory_space<vmem>>, vector<2x32xf32>,
    } else {
    }
    %c0_i32_13 = arith.constant 0 : i32
    %16 = arith.cmpi ne, %arg0, %c0_i32_13 : i32
    %17 = arith.extui %16 : i1 to i32
    %c0_i32_14 = arith.constant 0 : i32
    %18 = arith.cmpi ne, %17, %c0_i32_14 : i32
    scf.if %18 {
      %c0_16 = arith.constant 0 : index
      %c0_17 = arith.constant 0 : index
      %22 = vector.load %arg11[%c0_16, %c0_17] : memref<2x32xf32, #tpu.memory_space<vmem>>, vector<2x32xf32>
      %c0_18 = arith.constant 0 : index
      %c0_19 = arith.constant 0 : index
      %23 = vector.load %arg12[%c0_18, %c0_19] : memref<2x32xf32, #tpu.memory_space<vmem>>, vector<2x32xf32>
      %24 = vector.extract_strided_slice %12 {offsets = [14, 0], sizes = [2, 128], strides = [1, 1]} : vector<16x128xf32> to vector<2x128xf32>
      %25 = arith.truncf %22 : vector<2x32xf32> to vector<2x32xbf16>
      %cst_20 = arith.constant dense<0.000000e+00> : vector<2x128xf32>
      %26 = tpu.matmul %25, %3, %cst_20 {dimension_numbers = #tpu.dot_dimension_numbers<[1], [0], [0], [1], [0, 0, 1, 1], [], []>} : vector<2x32xbf16>, vector<32x128xbf16>, vector<2x128xf32> -> vector<2x128xf32>
      %27 = arith.addf %24, %26 : vector<2x128xf32>
      %28 = vector.extract_strided_slice %27 {offsets = [0, 0], sizes = [2, 96], strides = [1, 1]} : vector<2x128xf32> to vector<2x96xf32>
      %29 = arith.negf %28 : vector<2x96xf32>
      %30 = math.exp %29 : vector<2x96xf32>
      %cst_21 = arith.constant 1.000000e+00 : f32
      %31 = vector.broadcast %cst_21 : f32 to vector<2x96xf32>
      %32 = arith.addf %31, %30 : vector<2x96xf32>
      %33 = arith.divf %31, %32 : vector<2x96xf32>
      %34 = vector.extract_strided_slice %27 {offsets = [0, 96], sizes = [2, 32], strides = [1, 1]} : vector<2x128xf32> to vector<2x32xf32>
      %35 = math.tanh %34 : vector<2x32xf32>
      %36 = vector.extract_strided_slice %33 {offsets = [0, 32], sizes = [2, 32], strides = [1, 1]} : vector<2x96xf32> to vector<2x32xf32>
      %37 = arith.mulf %36, %23 : vector<2x32xf32>
      %38 = vector.extract_strided_slice %33 {offsets = [0, 0], sizes = [2, 32], strides = [1, 1]} : vector<2x96xf32> to vector<2x32xf32>
      %39 = arith.mulf %38, %35 : vector<2x32xf32>
      %40 = arith.addf %37, %39 : vector<2x32xf32>
      %41 = vector.extract_strided_slice %33 {offsets = [0, 64], sizes = [2, 32], strides = [1, 1]} : vector<2x96xf32> to vector<2x32xf32>
      %42 = math.tanh %40 : vector<2x32xf32>
      %43 = arith.mulf %41, %42 : vector<2x32xf32>
      %44 = vector.extract_strided_slice %12 {offsets = [12, 0], sizes = [2, 128], strides = [1, 1]} : vector<16x128xf32> to vector<2x128xf32>
      %45 = arith.truncf %43 : vector<2x32xf32> to vector<2x32xbf16>
      %cst_22 = arith.constant dense<0.000000e+00> : vector<2x128xf32>
      %46 = tpu.matmul %45, %3, %cst_22 {dimension_numbers = #tpu.dot_dimension_numbers<[1], [0], [0], [1], [0, 0, 1, 1], [], []>} : vector<2x32xbf16>, vector<32x128xbf16>, vector<2x128xf32> -> vector<2x128xf32>
      %47 = arith.addf %44, %46 : vector<2x128xf32>
      %48 = vector.extract_strided_slice %47 {offsets = [0, 0], sizes = [2, 96], strides = [1, 1]} : vector<2x128xf32> to vector<2x96xf32>
      %49 = arith.negf %48 : vector<2x96xf32>
      %50 = math.exp %49 : vector<2x96xf32>
      %cst_23 = arith.constant 1.000000e+00 : f32
      %51 = vector.broadcast %cst_23 : f32 to vector<2x96xf32>
      %52 = arith.addf %51, %50 : vector<2x96xf32>
      %53 = arith.divf %51, %52 : vector<2x96xf32>
      %54 = vector.extract_strided_slice %47 {offsets = [0, 96], sizes = [2, 32], strides = [1, 1]} : vector<2x128xf32> to vector<2x32xf32>
      %55 = math.tanh %54 : vector<2x32xf32>
      %56 = vector.extract_strided_slice %53 {offsets = [0, 32], sizes = [2, 32], strides = [1, 1]} : vector<2x96xf32> to vector<2x32xf32>
      %57 = arith.mulf %56, %40 : vector<2x32xf32>
      %58 = vector.extract_strided_slice %53 {offsets = [0, 0], sizes = [2, 32], strides = [1, 1]} : vector<2x96xf32> to vector<2x32xf32>
      %59 = arith.mulf %58, %55 : vector<2x32xf32>
      %60 = arith.addf %57, %59 : vector<2x32xf32>
      %61 = vector.extract_strided_slice %53 {offsets = [0, 64], sizes = [2, 32], strides = [1, 1]} : vector<2x96xf32> to vector<2x32xf32>
      %62 = math.tanh %60 : vector<2x32xf32>
      %63 = arith.mulf %61, %62 : vector<2x32xf32>
      %64 = vector.extract_strided_slice %12 {offsets = [10, 0], sizes = [2, 128], strides = [1, 1]} : vector<16x128xf32> to vector<2x128xf32>
      %65 = arith.truncf %63 : vector<2x32xf32> to vector<2x32xbf16>
      %cst_24 = arith.constant dense<0.000000e+00> : vector<2x128xf32>
      %66 = tpu.matmul %65, %3, %cst_24 {dimension_numbers = #tpu.dot_dimension_numbers<[1], [0], [0], [1], [0, 0, 1, 1], [], []>} : vector<2x32xbf16>, vector<32x128xbf16>, vector<2x128xf32> -> vector<2x128xf32>
      %67 = arith.addf %64, %66 : vector<2x128xf32>
      %68 = vector.extract_strided_slice %67 {offsets = [0, 0], sizes = [2, 96], strides = [1, 1]} : vector<2x128xf32> to vector<2x96xf32>
      %69 = arith.negf %68 : vector<2x96xf32>
      %70 = math.exp %69 : vector<2x96xf32>
      %cst_25 = arith.constant 1.000000e+00 : f32
      %71 = vector.broadcast %cst_25 : f32 to vector<2x96xf32>
      %72 = arith.addf %71, %70 : vector<2x96xf32>
      %73 = arith.divf %71, %72 : vector<2x96xf32>
      %74 = vector.extract_strided_slice %67 {offsets = [0, 96], sizes = [2, 32], strides = [1, 1]} : vector<2x128xf32> to vector<2x32xf32>
      %75 = math.tanh %74 : vector<2x32xf32>
      %76 = vector.extract_strided_slice %73 {offsets = [0, 32], sizes = [2, 32], strides = [1, 1]} : vector<2x96xf32> to vector<2x32xf32>
      %77 = arith.mulf %76, %60 : vector<2x32xf32>
      %78 = vector.extract_strided_slice %73 {offsets = [0, 0], sizes = [2, 32], strides = [1, 1]} : vector<2x96xf32> to vector<2x32xf32>
      %79 = arith.mulf %78, %75 : vector<2x32xf32>
      %80 = arith.addf %77, %79 : vector<2x32xf32>
      %81 = vector.extract_strided_slice %73 {offsets = [0, 64], sizes = [2, 32], strides = [1, 1]} : vector<2x96xf32> to vector<2x32xf32>
      %82 = math.tanh %80 : vector<2x32xf32>
      %83 = arith.mulf %81, %82 : vector<2x32xf32>
      %84 = vector.extract_strided_slice %12 {offsets = [8, 0], sizes = [2, 128], strides = [1, 1]} : vector<16x128xf32> to vector<2x128xf32>
      %85 = arith.truncf %83 : vector<2x32xf32> to vector<2x32xbf16>
      %cst_26 = arith.constant dense<0.000000e+00> : vector<2x128xf32>
      %86 = tpu.matmul %85, %3, %cst_26 {dimension_numbers = #tpu.dot_dimension_numbers<[1], [0], [0], [1], [0, 0, 1, 1], [], []>} : vector<2x32xbf16>, vector<32x128xbf16>, vector<2x128xf32> -> vector<2x128xf32>
      %87 = arith.addf %84, %86 : vector<2x128xf32>
      %88 = vector.extract_strided_slice %87 {offsets = [0, 0], sizes = [2, 96], strides = [1, 1]} : vector<2x128xf32> to vector<2x96xf32>
      %89 = arith.negf %88 : vector<2x96xf32>
      %90 = math.exp %89 : vector<2x96xf32>
      %cst_27 = arith.constant 1.000000e+00 : f32
      %91 = vector.broadcast %cst_27 : f32 to vector<2x96xf32>
      %92 = arith.addf %91, %90 : vector<2x96xf32>
      %93 = arith.divf %91, %92 : vector<2x96xf32>
      %94 = vector.extract_strided_slice %87 {offsets = [0, 96], sizes = [2, 32], strides = [1, 1]} : vector<2x128xf32> to vector<2x32xf32>
      %95 = math.tanh %94 : vector<2x32xf32>
      %96 = vector.extract_strided_slice %93 {offsets = [0, 32], sizes = [2, 32], strides = [1, 1]} : vector<2x96xf32> to vector<2x32xf32>
      %97 = arith.mulf %96, %80 : vector<2x32xf32>
      %98 = vector.extract_strided_slice %93 {offsets = [0, 0], sizes = [2, 32], strides = [1, 1]} : vector<2x96xf32> to vector<2x32xf32>
      %99 = arith.mulf %98, %95 : vector<2x32xf32>
      %100 = arith.addf %97, %99 : vector<2x32xf32>
      %101 = vector.extract_strided_slice %93 {offsets = [0, 64], sizes = [2, 32], strides = [1, 1]} : vector<2x96xf32> to vector<2x32xf32>
      %102 = math.tanh %100 : vector<2x32xf32>
      %103 = arith.mulf %101, %102 : vector<2x32xf32>
      %104 = vector.extract_strided_slice %12 {offsets = [6, 0], sizes = [2, 128], strides = [1, 1]} : vector<16x128xf32> to vector<2x128xf32>
      %105 = arith.truncf %103 : vector<2x32xf32> to vector<2x32xbf16>
      %cst_28 = arith.constant dense<0.000000e+00> : vector<2x128xf32>
      %106 = tpu.matmul %105, %3, %cst_28 {dimension_numbers = #tpu.dot_dimension_numbers<[1], [0], [0], [1], [0, 0, 1, 1], [], []>} : vector<2x32xbf16>, vector<32x128xbf16>, vector<2x128xf32> -> vector<2x128xf32>
      %107 = arith.addf %104, %106 : vector<2x128xf32>
      %108 = vector.extract_strided_slice %107 {offsets = [0, 0], sizes = [2, 96], strides = [1, 1]} : vector<2x128xf32> to vector<2x96xf32>
      %109 = arith.negf %108 : vector<2x96xf32>
      %110 = math.exp %109 : vector<2x96xf32>
      %cst_29 = arith.constant 1.000000e+00 : f32
      %111 = vector.broadcast %cst_29 : f32 to vector<2x96xf32>
      %112 = arith.addf %111, %110 : vector<2x96xf32>
      %113 = arith.divf %111, %112 : vector<2x96xf32>
      %114 = vector.extract_strided_slice %107 {offsets = [0, 96], sizes = [2, 32], strides = [1, 1]} : vector<2x128xf32> to vector<2x32xf32>
      %115 = math.tanh %114 : vector<2x32xf32>
      %116 = vector.extract_strided_slice %113 {offsets = [0, 32], sizes = [2, 32], strides = [1, 1]} : vector<2x96xf32> to vector<2x32xf32>
      %117 = arith.mulf %116, %100 : vector<2x32xf32>
      %118 = vector.extract_strided_slice %113 {offsets = [0, 0], sizes = [2, 32], strides = [1, 1]} : vector<2x96xf32> to vector<2x32xf32>
      %119 = arith.mulf %118, %115 : vector<2x32xf32>
      %120 = arith.addf %117, %119 : vector<2x32xf32>
      %121 = vector.extract_strided_slice %113 {offsets = [0, 64], sizes = [2, 32], strides = [1, 1]} : vector<2x96xf32> to vector<2x32xf32>
      %122 = math.tanh %120 : vector<2x32xf32>
      %123 = arith.mulf %121, %122 : vector<2x32xf32>
      %124 = vector.extract_strided_slice %12 {offsets = [4, 0], sizes = [2, 128], strides = [1, 1]} : vector<16x128xf32> to vector<2x128xf32>
      %125 = arith.truncf %123 : vector<2x32xf32> to vector<2x32xbf16>
      %cst_30 = arith.constant dense<0.000000e+00> : vector<2x128xf32>
      %126 = tpu.matmul %125, %3, %cst_30 {dimension_numbers = #tpu.dot_dimension_numbers<[1], [0], [0], [1], [0, 0, 1, 1], [], []>} : vector<2x32xbf16>, vector<32x128xbf16>, vector<2x128xf32> -> vector<2x128xf32>
      %127 = arith.addf %124, %126 : vector<2x128xf32>
      %128 = vector.extract_strided_slice %127 {offsets = [0, 0], sizes = [2, 96], strides = [1, 1]} : vector<2x128xf32> to vector<2x96xf32>
      %129 = arith.negf %128 : vector<2x96xf32>
      %130 = math.exp %129 : vector<2x96xf32>
      %cst_31 = arith.constant 1.000000e+00 : f32
      %131 = vector.broadcast %cst_31 : f32 to vector<2x96xf32>
      %132 = arith.addf %131, %130 : vector<2x96xf32>
      %133 = arith.divf %131, %132 : vector<2x96xf32>
      %134 = vector.extract_strided_slice %127 {offsets = [0, 96], sizes = [2, 32], strides = [1, 1]} : vector<2x128xf32> to vector<2x32xf32>
      %135 = math.tanh %134 : vector<2x32xf32>
      %136 = vector.extract_strided_slice %133 {offsets = [0, 32], sizes = [2, 32], strides = [1, 1]} : vector<2x96xf32> to vector<2x32xf32>
      %137 = arith.mulf %136, %120 : vector<2x32xf32>
      %138 = vector.extract_strided_slice %133 {offsets = [0, 0], sizes = [2, 32], strides = [1, 1]} : vector<2x96xf32> to vector<2x32xf32>
      %139 = arith.mulf %138, %135 : vector<2x32xf32>
      %140 = arith.addf %137, %139 : vector<2x32xf32>
      %141 = vector.extract_strided_slice %133 {offsets = [0, 64], sizes = [2, 32], strides = [1, 1]} : vector<2x96xf32> to vector<2x32xf32>
      %142 = math.tanh %140 : vector<2x32xf32>
      %143 = arith.mulf %141, %142 : vector<2x32xf32>
      %144 = vector.extract_strided_slice %12 {offsets = [2, 0], sizes = [2, 128], strides = [1, 1]} : vector<16x128xf32> to vector<2x128xf32>
      %145 = arith.truncf %143 : vector<2x32xf32> to vector<2x32xbf16>
      %cst_32 = arith.constant dense<0.000000e+00> : vector<2x128xf32>
      %146 = tpu.matmul %145, %3, %cst_32 {dimension_numbers = #tpu.dot_dimension_numbers<[1], [0], [0], [1], [0, 0, 1, 1], [], []>} : vector<2x32xbf16>, vector<32x128xbf16>, vector<2x128xf32> -> vector<2x128xf32>
      %147 = arith.addf %144, %146 : vector<2x128xf32>
      %148 = vector.extract_strided_slice %147 {offsets = [0, 0], sizes = [2, 96], strides = [1, 1]} : vector<2x128xf32> to vector<2x96xf32>
      %149 = arith.negf %148 : vector<2x96xf32>
      %150 = math.exp %149 : vector<2x96xf32>
      %cst_33 = arith.constant 1.000000e+00 : f32
      %151 = vector.broadcast %cst_33 : f32 to vector<2x96xf32>
      %152 = arith.addf %151, %150 : vector<2x96xf32>
      %153 = arith.divf %151, %152 : vector<2x96xf32>
      %154 = vector.extract_strided_slice %147 {offsets = [0, 96], sizes = [2, 32], strides = [1, 1]} : vector<2x128xf32> to vector<2x32xf32>
      %155 = math.tanh %154 : vector<2x32xf32>
      %156 = vector.extract_strided_slice %153 {offsets = [0, 32], sizes = [2, 32], strides = [1, 1]} : vector<2x96xf32> to vector<2x32xf32>
      %157 = arith.mulf %156, %140 : vector<2x32xf32>
      %158 = vector.extract_strided_slice %153 {offsets = [0, 0], sizes = [2, 32], strides = [1, 1]} : vector<2x96xf32> to vector<2x32xf32>
      %159 = arith.mulf %158, %155 : vector<2x32xf32>
      %160 = arith.addf %157, %159 : vector<2x32xf32>
      %161 = vector.extract_strided_slice %153 {offsets = [0, 64], sizes = [2, 32], strides = [1, 1]} : vector<2x96xf32> to vector<2x32xf32>
      %162 = math.tanh %160 : vector<2x32xf32>
      %163 = arith.mulf %161, %162 : vector<2x32xf32>
      %164 = vector.extract_strided_slice %12 {offsets = [0, 0], sizes = [2, 128], strides = [1, 1]} : vector<16x128xf32> to vector<2x128xf32>
      %165 = arith.truncf %163 : vector<2x32xf32> to vector<2x32xbf16>
      %cst_34 = arith.constant dense<0.000000e+00> : vector<2x128xf32>
      %166 = tpu.matmul %165, %3, %cst_34 {dimension_numbers = #tpu.dot_dimension_numbers<[1], [0], [0], [1], [0, 0, 1, 1], [], []>} : vector<2x32xbf16>, vector<32x128xbf16>, vector<2x128xf32> -> vector<2x128xf32>
      %167 = arith.addf %164, %166 : vector<2x128xf32>
      %168 = vector.extract_strided_slice %167 {offsets = [0, 0], sizes = [2, 96], strides = [1, 1]} : vector<2x128xf32> to vector<2x96xf32>
      %169 = arith.negf %168 : vector<2x96xf32>
      %170 = math.exp %169 : vector<2x96xf32>
      %cst_35 = arith.constant 1.000000e+00 : f32
      %171 = vector.broadcast %cst_35 : f32 to vector<2x96xf32>
      %172 = arith.addf %171, %170 : vector<2x96xf32>
      %173 = arith.divf %171, %172 : vector<2x96xf32>
      %174 = vector.extract_strided_slice %167 {offsets = [0, 96], sizes = [2, 32], strides = [1, 1]} : vector<2x128xf32> to vector<2x32xf32>
      %175 = math.tanh %174 : vector<2x32xf32>
      %176 = vector.extract_strided_slice %173 {offsets = [0, 32], sizes = [2, 32], strides = [1, 1]} : vector<2x96xf32> to vector<2x32xf32>
      %177 = arith.mulf %176, %160 : vector<2x32xf32>
      %178 = vector.extract_strided_slice %173 {offsets = [0, 0], sizes = [2, 32], strides = [1, 1]} : vector<2x96xf32> to vector<2x32xf32>
      %179 = arith.mulf %178, %175 : vector<2x32xf32>
      %180 = arith.addf %177, %179 : vector<2x32xf32>
      %181 = vector.extract_strided_slice %173 {offsets = [0, 64], sizes = [2, 32], strides = [1, 1]} : vector<2x96xf32> to vector<2x32xf32>
      %182 = math.tanh %180 : vector<2x32xf32>
      %183 = arith.mulf %181, %182 : vector<2x32xf32>
      %184 = tpu.concatenate %183, %163, %143, %123, %103, %83, %63, %43 in 0 : vector<2x32xf32>, vector<2x32xf32>, vector<2x32xf32>, vector<2x32xf32>, vector<2x32xf32>, vector<2x32xf32>, vector<2x32xf32>, vector<2x32xf32> -> vector<16x32xf32>
      %c0_36 = arith.constant 0 : index
      %c0_37 = arith.constant 0 : index
      %c0_38 = arith.constant 0 : index
      %185 = vector.load %arg8[%c0_36, %c0_37, %c0_38] : memref<1x16x32xf32, #tpu.memory_space<vmem>>, vector<1x16x32xf32>
      %186 = vector.shape_cast %185 : vector<1x16x32xf32> to vector<16x32xf32>
      %187 = vector.shape_cast %184 : vector<16x32xf32> to vector<1x16x32xf32>
      tpu.vector_store %arg8[%c0_36, %c0_37, %c0_38], %187 {strides = array<i32>} : memref<1x16x32xf32, #tpu.memory_space<vmem>>, vector<1x16x32xf32>,
      %c0_39 = arith.constant 0 : index
      %c0_40 = arith.constant 0 : index
      %188 = vector.load %arg11[%c0_39, %c0_40] : memref<2x32xf32, #tpu.memory_space<vmem>>, vector<2x32xf32>
      tpu.vector_store %arg11[%c0_39, %c0_40], %183 {strides = array<i32>} : memref<2x32xf32, #tpu.memory_space<vmem>>, vector<2x32xf32>,
      %c0_41 = arith.constant 0 : index
      %c0_42 = arith.constant 0 : index
      %189 = vector.load %arg12[%c0_41, %c0_42] : memref<2x32xf32, #tpu.memory_space<vmem>>, vector<2x32xf32>
      tpu.vector_store %arg12[%c0_41, %c0_42], %180 {strides = array<i32>} : memref<2x32xf32, #tpu.memory_space<vmem>>, vector<2x32xf32>,
    } else {
    }
    %c1_i32 = arith.constant 1 : i32
    %19 = arith.cmpi eq, %arg1, %c1_i32 : i32
    %20 = arith.extui %19 : i1 to i32
    %c0_i32_15 = arith.constant 0 : i32
    %21 = arith.cmpi ne, %20, %c0_i32_15 : i32
    scf.if %21 {
      %c0_16 = arith.constant 0 : index
      %c0_17 = arith.constant 0 : index
      %22 = vector.load %arg11[%c0_16, %c0_17] : memref<2x32xf32, #tpu.memory_space<vmem>>, vector<2x32xf32>
      %c0_18 = arith.constant 0 : index
      %c0_19 = arith.constant 0 : index
      %c0_20 = arith.constant 0 : index
      %23 = vector.load %arg9[%c0_18, %c0_19, %c0_20] : memref<1x2x32xf32, #tpu.memory_space<vmem>>, vector<1x2x32xf32>
      %24 = vector.shape_cast %23 : vector<1x2x32xf32> to vector<2x32xf32>
      %25 = vector.shape_cast %22 : vector<2x32xf32> to vector<1x2x32xf32>
      tpu.vector_store %arg9[%c0_18, %c0_19, %c0_20], %25 {strides = array<i32>} : memref<1x2x32xf32, #tpu.memory_space<vmem>>, vector<1x2x32xf32>,
      %c0_21 = arith.constant 0 : index
      %c0_22 = arith.constant 0 : index
      %26 = vector.load %arg12[%c0_21, %c0_22] : memref<2x32xf32, #tpu.memory_space<vmem>>, vector<2x32xf32>
      %c0_23 = arith.constant 0 : index
      %c0_24 = arith.constant 0 : index
      %c0_25 = arith.constant 0 : index
      %27 = vector.load %arg10[%c0_23, %c0_24, %c0_25] : memref<1x2x32xf32, #tpu.memory_space<vmem>>, vector<1x2x32xf32>
      %28 = vector.shape_cast %27 : vector<1x2x32xf32> to vector<2x32xf32>
      %29 = vector.shape_cast %26 : vector<2x32xf32> to vector<1x2x32xf32>
      tpu.vector_store %arg10[%c0_23, %c0_24, %c0_25], %29 {strides = array<i32>} : memref<1x2x32xf32, #tpu.memory_space<vmem>>, vector<1x2x32xf32>,
    } else {
    }
    return
  }
  func.func @transform_0(%arg0: i32, %arg1: i32) -> (i32, i32) {
    %c2_i32 = arith.constant 2 : i32
    %0 = arith.muli %c2_i32, %arg1 : i32
    %c1_i32 = arith.constant 1 : i32
    %1 = arith.subi %c1_i32, %0 : i32
    %2 = arith.muli %arg0, %1 : i32
    %3 = arith.addi %arg1, %2 : i32
    %c0_i32 = arith.constant 0 : i32
    %c0_i32_0 = arith.constant 0 : i32
    return %3, %c0_i32 : i32, i32
  }
  func.func @transform_1(%arg0: i32, %arg1: i32) -> (i32, i32, i32) {
    %c0_i32 = arith.constant 0 : i32
    %c0_i32_0 = arith.constant 0 : i32
    %c0_i32_1 = arith.constant 0 : i32
    return %arg0, %c0_i32, %c0_i32_0 : i32, i32, i32
  }
  func.func @transform_2(%arg0: i32, %arg1: i32) -> (i32, i32, i32) {
    %c0_i32 = arith.constant 0 : i32
    %c0_i32_0 = arith.constant 0 : i32
    %c0_i32_1 = arith.constant 0 : i32
    return %arg0, %c0_i32, %c0_i32_0 : i32, i32, i32
  }
  func.func @transform_3(%arg0: i32, %arg1: i32) -> (i32, i32, i32) {
    %c0_i32 = arith.constant 0 : i32
    %c0_i32_0 = arith.constant 0 : i32
    %c0_i32_1 = arith.constant 0 : i32
    return %arg0, %c0_i32, %c0_i32_0 : i32, i32, i32
  }
  func.func @transform_4(%arg0: i32, %arg1: i32) -> (i32, i32, i32) {
    %c0_i32 = arith.constant 0 : i32
    %c0_i32_0 = arith.constant 0 : i32
    %c0_i32_1 = arith.constant 0 : i32
    return %arg0, %c0_i32, %c0_i32_0 : i32, i32, i32
  }
  func.func @transform_5(%arg0: i32, %arg1: i32) -> (i32, i32, i32) {
    %c0_i32 = arith.constant 0 : i32
    %c0_i32_0 = arith.constant 0 : i32
    %c0_i32_1 = arith.constant 0 : i32
    return %arg0, %c0_i32, %c0_i32_0 : i32, i32, i32
  }
  func.func @transform_6(%arg0: i32, %arg1: i32) -> (i32, i32, i32) {
    %c2_i32 = arith.constant 2 : i32
    %0 = arith.muli %c2_i32, %arg1 : i32
    %c1_i32 = arith.constant 1 : i32
    %1 = arith.subi %c1_i32, %0 : i32
    %2 = arith.muli %arg0, %1 : i32
    %3 = arith.addi %arg1, %2 : i32
    %c0_i32 = arith.constant 0 : i32
    %c0_i32_0 = arith.constant 0 : i32
    return %arg0, %3, %c0_i32 : i32, i32, i32
  }
  func.func @transform_7(%arg0: i32, %arg1: i32) -> (i32, i32, i32) {
    %c0_i32 = arith.constant 0 : i32
    %c0_i32_0 = arith.constant 0 : i32
    %c0_i32_1 = arith.constant 0 : i32
    return %arg0, %c0_i32, %c0_i32_0 : i32, i32, i32
  }
  func.func @transform_8(%arg0: i32, %arg1: i32) -> (i32, i32, i32) {
    %c0_i32 = arith.constant 0 : i32
    %c0_i32_0 = arith.constant 0 : i32
    %c0_i32_1 = arith.constant 0 : i32
    return %arg0, %c0_i32, %c0_i32_0 : i32, i32, i32
  }
}

</mosaic_0001>

<bundles_post_ra>
// kernel: tpu_custom_call.1
= control target key start
LH: loop header
LB: loop body
LE: loop exit
PB: predicated region body
PF: predicated region fallthrough
CT: control target
= control target key end

     0   :  { %s3969_s0 = inlined_call_operand.hbm [shape: bf16[32,32], index: 0, kind: input, shape index: {}]   ;;  %s3970_s1 = inlined_call_operand.hbm [shape: bf16[2,32,128], index: 1, kind: input, shape index: {}]   ;;  %s3971_s2 = inlined_call_operand.hbm [shape: bf16[2,32,128], index: 2, kind: input, shape index: {}]   ;;  %s3972_s3 = inlined_call_operand.vmem [shape: f32[2,1,128], index: 3, kind: input, shape index: {}]   ;;  %s3973_s4 = inlined_call_operand.vmem [shape: f32[2,2,32], index: 4, kind: input, shape index: {}]   ;;  %s3974_s5 = inlined_call_operand.vmem [shape: f32[2,2,32], index: 5, kind: input, shape index: {}]   ;;  %s3975_s6 = inlined_call_operand.hbm [shape: f32[2,32,32], index: 6, kind: output, shape index: {0}]   ;;  %s3976_s7 = inlined_call_operand.hbm [shape: f32[2,2,32], index: 7, kind: output, shape index: {1}]   ;;  %s3977_s8 = inlined_call_operand.hbm [shape: f32[2,2,32], index: 8, kind: output, shape index: {2}]  }
   0x1   :  { %4013 = sst [smem:[#allocation33_spill]] %s3969_s0 }
   0x2   :  { %4014 = sst [smem:[#allocation34_spill]] %s3970_s1 }
   0x3   :  { %4015 = sst [smem:[#allocation35_spill]] %s3971_s2 }
   0x4   :  { %4016 = sst [smem:[#allocation36_spill]] %s3972_s3 }
   0x5   :  { %4017 = sst [smem:[#allocation37_spill]] %s3973_s4 }
   0x6   :  { %4018 = sst [smem:[#allocation38_spill]] %s3974_s5 }
   0x7   :  { %4019 = sst [smem:[#allocation39_spill]] %s3975_s6 }
   0x8   :  { %4020 = sst [smem:[#allocation40_spill]] %s3976_s7 }
   0x9   :  { %4021 = sst [smem:[#allocation41_spill]] %s3977_s8 }
   0xa   :  { %14 = vsyncpa [#allocation5], 0 }
   0xb   :  { %16 = vsyncpa [#allocation5 + $0x1], 0 }
   0xc   :  { %17 = vsyncpa [#allocation8], 0 }
   0xd   :  { %19 = vsyncpa [#allocation8 + $0x1], 0 }
   0xe   :  { %20 = vsyncpa [#allocation6], 0 }
   0xf   :  { %22 = vsyncpa [#allocation6 + $0x1], 0 }
  0x10   :  { %23 = vsyncpa [#allocation12], 0 }
  0x11   :  { %25 = vsyncpa [#allocation12 + $0x1], 0  ;;  %s3164_s27 = smov 0   ;;  %s3166_s28 = smov 0  }
  0x12   :  { %s3168_s29 = smov 0   ;;  %s3170_s30 = smov 0  }
  0x13   :  { %s3172_s9 = smov 0   ;;  %s3174_s10 = smov 0  }
  0x14   :  { %s3176_s11 = smov 0   ;;  %s3178_s12 = smov 0  }
  0x15   :  { %s3180_s13 = smov 0   ;;  %s3182_s14 = smov 0  }
  0x16   :  { %s3184_s15 = smov 0   ;;  %s3186_s16 = smov 0  }
  0x17   :  { %s3188_s17 = smov 0   ;;  %s3190_s18 = smov 0  }
  0x18 LB: > { %4022 = sst [smem:[#allocation18_spill]] %s3059_s9  ;;  %s3233_s19 = sadd.s32 4294967295, %s3095_s18   ;;  %s3095_s18 = sphi %s3190_s18, %s31_s18   ;;  %s3091_s17 = sphi %s3188_s17, %s4097_s17   ;;  %s3087_s16 = sphi %s3186_s16, %s4096_s16   ;;  %s3083_s15 = sphi %s3184_s15, %s4105_s15   ;;  %s3079_s14 = sphi %s3182_s14, %s4104_s14   ;;  %s3075_s13 = sphi %s3180_s13, %s4093_s13   ;;  %s3071_s12 = sphi %s3178_s12, %s4092_s12   ;;  %s3067_s11 = sphi %s3176_s11, %s4091_s11   ;;  %s3063_s10 = sphi %s3174_s10, %s4103_s10   ;;  %s3059_s9 = sphi %s3172_s9, %s4102_s9   ;;  %s3055_s30 = sphi %s3170_s30, %s4089_s30   ;;  %s3051_s29 = sphi %s3168_s29, %s4101_s29   ;;  %s3047_s28 = sphi %s3166_s28, %s4100_s28   ;;  %s3043_s27 = sphi %s3164_s27, %s4099_s27  }
  0x19   : > { %4023 = sst [smem:[#allocation19_spill]] %s3071_s12  ;;  %s3978_s20 = sadd.s32 4294967294, %s3095_s18  }
  0x1a   : > { %4024 = sst [smem:[#allocation20_spill]] %s3075_s13  ;;  %p3994_p0 = scmp.eq.s32.totalorder %s3095_s18, 0 }
  0x1b   : > { %4025 = sst [smem:[#allocation21_spill]] %s3079_s14  ;;  %p3993_p1 = scmp.eq.s32.totalorder %s3233_s19, 0 }
  0x1c   : > { %4026 = sst [smem:[#allocation22_spill]] %s3083_s15  ;;  %p91_p2 = scmp.ne.s32.totalorder %s3063_s10, %s3059_s9 }
  0x1d   : > { %4027 = sst [smem:[#allocation23_spill]] %s3087_s16  ;;  %p97_p3 = scmp.ne.s32.totalorder %s3059_s9, %s3055_s30 }
  0x1e   : > { %4028 = sst [smem:[#allocation24_spill]] %s3091_s17  ;;  %p3992_p4 = scmp.eq.s32.totalorder %s3233_s19, 3 }
  0x1f   : > { %p3245_p5 = por %p91_p2, %p3994_p0  ;;  %p3251_p6 = scmp.eq.s32.totalorder %s3978_s20, 3 }
  0x20   : > { %p3257_p7 = por %p97_p3, %p3993_p1  ;;  %p3263_p8 = por %p3992_p4, %p91_p2 }
  0x21   : > { %p3269_p9 = por %p3251_p6, %p97_p3  ;;  %p3991_p10 = scmp.lt.s32.totalorder %s3095_s18, 4 }
  0x22   : > { %s4031_s24 = scalar_select %p3257_p7, 1, 0 }
  0x23   : > { %s4033_s25 = scalar_select %p3263_p8, 1, 0 }
  0x24   : > { %4032 = sst [smem:[#allocation25_spill]] %s4031_s24  ;;  %s338_s30 = sand.u32 1, %s3095_s18  }
  0x25   : > { %4034 = sst [smem:[#allocation26_spill]] %s4033_s25  ;;  %s340_s20 = sand.u32 1, %s3063_s10  }
  0x26   : > { %s4035_s26 = scalar_select %p3269_p9, 1, 0 }
  0x27   : > { %s3276_s21 = sshll.u32 %s340_s20, 4  ;;  %s2315_s6 = sshll.u32 %s3091_s17, 8 }
  0x28   : > { %4036 = sst [smem:[#allocation27_spill]] %s4035_s26  ;;  %s4037_s1 = sld [smem:[#allocation34_spill]] }
  0x29   : > { %s342_s25 = scalar_lea.vmem [#allocation7], %s3276_s21  ;;  %p3289_p11 = pnand %p3991_p10, %p3245_p5 }
  0x2a   : > { %s349_s5 = sshll.u32 %s342_s25, 4  ;;  %s4039_s2 = sld [smem:[#allocation35_spill]]  ;;  %s3293_s5 = int_to_ptr.vmem [resolvable:$true] %s349_s5 }
  0x2b   : > { %s3300_s4 = scalar_lea.sflag [#allocation8], %s338_s30  ;;  %p2797_p13 = pneg %p3289_p11 }
  0x2e   : > { %s3282_s14 = scalar_lea.hbm %s4037_s1, %s2315_s6  ;;  %s2800_s15 = scalar_lea.hbm %s4037_s1, 512 }
  0x2f   : > { %s2795_s3 = scalar_lea.hbm %s3282_s14, 256  ;;  %p2801_p5 = scmp.lt.u32.totalorder %s3282_s14, %s4037_s1 }
  0x30   : > { %s3298_s8 = scalar_lea.hbm %s4039_s2, %s2315_s6  ;;  %p2796_p12 = scmp.ne.s32.totalorder %s3282_s14, %s2795_s3 }
  0x31   : > { %p2802_p10 = scmp.lt.u32.totalorder %s2800_s15, %s2795_s3  ;;  %p2804_p1 = scmp.lt.u32.totalorder %s2795_s3, %s3282_s14 }
  0x32   : > { %p2798_p2 = pnand %p2797_p13, %p2796_p12 }
  0x33   : > { %p2803_p4 = por %p2802_p10, %p2801_p5 }
  0x34   : > { %p2799_p3 = pneg %p2798_p2 }
  0x35   : > { %p2805_p0 = por %p2804_p1, %p2803_p4 }
  0x37   : > { %p2806_p9 = pnand %p2805_p0, %p2799_p3 }
  0x39   : > { %2809 = shalt.err (!%p2806_p9)
}
  0x3a   : > { %s2810_s6 = scalar_lea.vmem %s3293_s5, 256  ;;  %s3097_s30 = smov [#allocation7]  }
  0x3b   : > { %p2811_p12 = scmp.ne.s32.totalorder %s3293_s5, %s2810_s6  ;;  %s2815_s20 = sshll.u32 %s3097_s30, 4  ;;  %s2816_s20 = int_to_ptr.vmem [resolvable:$false] %s2815_s20 }
  0x3c   : > { %s2817_s9 = scalar_lea.vmem %s2816_s20, 512  ;;  %p2818_p7 = scmp.lt.s32.totalorder %s3293_s5, %s2816_s20 }
  0x3d   : > { %p2813_p2 = pnand %p2811_p12, %p2797_p13  ;;  %p2819_p10 = scmp.lt.s32.totalorder %s2817_s9, %s2810_s6 }
  0x3f   : > { %p2814_p8 = pneg %p2813_p2  ;;  %p2820_p5 = por %p2819_p10, %p2818_p7 }
  0x41   : > { %p2821_p1 = pnand %p2820_p5, %p2814_p8 }
  0x43   : > { %2824 = shalt.err (!%p2821_p1)
}
  0x44   : > { %s3997_s3 = smov 64   ;;  %s3999_s15 = smov 4  }
  0x45   : > { %2522 = dma.hbm_to_vmem [thread:$0]  (!%p3289_p11), %s3282_s14, 256, %s3293_s5, %s3300_s4, %s3997_s3, %s3997_s3, %s3999_s15  }
  0x46   : > { %s363_s24 = scalar_lea.vmem [#allocation9], %s3276_s21  ;;  %p2249_p0 = scmp.ge.s32.totalorder %s3095_s18, 1 }
  0x47   : > { %s370_s7 = sshll.u32 %s363_s24, 4  ;;  %p398_p4 = scmp.lt.s32.totalorder %s3095_s18, 5  ;;  %s3333_s7 = int_to_ptr.vmem [resolvable:$true] %s370_s7 }
  0x48   : > { %s40_s25 = sadd.s32 1, %s3087_s16  ;;  %s43_s5 = sadd.s32 1, %s3091_s17 }
  0x49   : > { %p3336_p7 = pnand %p2249_p0, %p398_p4  ;;  %p41_p8 = scmp.ge.s32.totalorder %s40_s25, 2 }
  0x4a   : > { %s2233_s14 = sshll.u32 %s3087_s16, 1  ;;  %s58_s21 = sadd.s32 1, %s3075_s13 }
  0x4b   : > { %s4040_s22 = scalar_select %p3336_p7, 1, 0 }
  0x4c   : > { %s4107_s25 = smov (%p41_p8, %s40_s25), 0  ;;  %s4109_s5 = smov (!%p41_p8, %s43_s5), %s3091_s17 }
  0x4d   : > { %4041 = sst [smem:[#allocation28_spill]] %s4040_s22  ;;  %s48_s6 = ssub.s32 1, %s2233_s14 }
  0x4e   : > { %4042 = sst [smem:[#allocation29_spill]] %s4107_s25  ;;  %s2234_s30 = sshll.u32 %s4107_s25, 1 }
  0x4f   : > { %p45_p9 = scmp.ge.s32.totalorder %s4109_s5, 2  ;;  %s49_s20 = smul.u32 %s3091_s17, %s48_s6 }
  0x50   : > { %s52_s9 = ssub.s32 1, %s2234_s30  ;;  %p65_p3 = scmp.ne.s32.totalorder %s3075_s13, %s3071_s12 }
  0x51   : > { %s4111_s5 = smov (%p45_p9, %s4109_s5), 0  ;;  %s50_s24 = sadd.s32 %s3087_s16, %s49_s20 }
  0x52   : > { %4043 = sst [smem:[#allocation30_spill]] %s4111_s5  ;;  %p4044_p12 = scmp.eq.s32.totalorder %s3095_s18, 0 }
  0x53   : > { %s53_s6 = smul.u32 %s52_s9, %s4111_s5  ;;  %p71_p10 = scmp.ne.s32.totalorder %s3071_s12, %s3067_s11 }
  0x54   : > { %p3356_p2 = por %p4044_p12, %p65_p3  ;;  %s81_s30 = ssub.s32 %s3091_s17, %s4111_s5 }
  0x55   : > { %s224_s3 = sadd.s32 1, %s3051_s29  ;;  %s54_s15 = sadd.s32 %s53_s6, %s4107_s25 }
  0x56   : > { %p4046_p5 = scmp.eq.s32.totalorder %s3233_s19, 0  ;;  %s55_s1 = ssub.s32 %s50_s24, %s54_s15 }
  0x57   : > { %p82_p0 = scmp.eq.s32.totalorder %s81_s30, 0  ;;  %p56_p4 = scmp.eq.s32.totalorder %s55_s1, 0 }
  0x58   : > { %p3369_p1 = por %p4046_p5, %p71_p10  ;;  %s221_s16 = sor.u32 %s81_s30, %s55_s1 }
  0x59   : > { %s4048_s22 = sadd.s32 1, %s3063_s10  ;;  %p222_p8 = scmp.eq.s32.totalorder %s221_s16, 0 }
  0x5a   : > { %s4047_s20 = scalar_select %p3369_p1, 1, 0 }
  0x5b   : > { %s3376_s9 = scalar_select %p82_p0, %s3063_s10, %s4048_s22  }
  0x5c   : > { %s3379_s11 = scalar_select %p56_p4, %s3075_s13, %s58_s21  }
  0x5d   : > { %4049 = sst [smem:[#allocation31_spill]] %s3376_s9  ;;  %p234_p9 = scmp.ne.s32.totalorder %s3051_s29, %s3047_s28 }
  0x5e   : > { %4050 = sst [smem:[#allocation32_spill]] %s3379_s11  ;;  %p240_p3 = scmp.ne.s32.totalorder %s3047_s28, %s3043_s27 }
  0x5f   : > { %s313_s6 = sand.u32 1, %s3075_s13   ;;  %p4051_p12 = scmp.eq.s32.totalorder %s3233_s19, 3 }
  0x60   : > { %s3387_s5 = scalar_select %p222_p8, %s3051_s29, %s224_s3  }
  0x61   : > { %p3391_p10 = por %p4051_p12, %p234_p9  ;;  %p3397_p5 = por %p3251_p6, %p240_p3 }
  0x62   : > { %s2239_s16 = sshll.u32 %s313_s6, 3  ;;  %s2314_s22 = sshll.u32 %s50_s24, 7 }
  0x63   : > { %s4052_s1 = scalar_select %p3391_p10, 1, 0 }
  0x64   : > { %s4053_s15 = scalar_select %p3397_p5, 1, 0 }
  0x65   : > { %s4054_s0 = sld [smem:[#allocation33_spill]]  ;;  %s317_s3 = scalar_lea.vmem [#allocation4], %s2239_s16 }
  0x66   : > { %s328_s17 = sshll.u32 %s317_s3, 4  ;;  %p4055_p0 = scmp.lt.s32.totalorder %s3095_s18, 4  ;;  %s3408_s17 = int_to_ptr.vmem [resolvable:$true] %s328_s17 }
  0x67   : > { %s2825_s11 = scalar_lea.hbm %s3298_s8, 256  ;;  %p2831_p3 = scmp.lt.u32.totalorder %s3298_s8, %s4039_s2 }
  0x68   : > { %p3414_p4 = pnand %p4055_p0, %p3356_p2  ;;  %p2826_p6 = scmp.ne.s32.totalorder %s3298_s8, %s2825_s11 }
  0x69   : > { %p2834_p2 = scmp.lt.u32.totalorder %s2825_s11, %s3298_s8 }
  0x6a   : > { %p2828_p8 = pnand %p2826_p6, %p2797_p13 }
  0x6b   : > { %s3406_s25 = scalar_lea.hbm %s4054_s0, %s2314_s22  ;;  %s2830_s22 = scalar_lea.hbm %s4039_s2, 512 }
  0x6c   : > { %p2829_p9 = pneg %p2828_p8  ;;  %p2832_p12 = scmp.lt.u32.totalorder %s2830_s22, %s2825_s11 }
  0x6e   : > { %p2833_p5 = por %p2832_p12, %p2831_p3 }
  0x70   : > { %p2835_p0 = por %p2834_p2, %p2833_p5 }
  0x72   : > { %p2836_p10 = pnand %p2835_p0, %p2829_p9 }
  0x74   : > { %2839 = shalt.err (!%p2836_p10)
}
  0x75   : > { %s2840_s14 = scalar_lea.vmem %s3333_s7, 256  ;;  %s3100_s3 = smov [#allocation9]  }
  0x76   : > { %p2841_p6 = scmp.ne.s32.totalorder %s3333_s7, %s2840_s14  ;;  %s2845_s24 = sshll.u32 %s3100_s3, 4  ;;  %s2846_s24 = int_to_ptr.vmem [resolvable:$false] %s2845_s24 }
  0x77   : > { %s2847_s21 = scalar_lea.vmem %s2846_s24, 512  ;;  %p2848_p7 = scmp.lt.s32.totalorder %s3333_s7, %s2846_s24 }
  0x78   : > { %p2843_p8 = pnand %p2841_p6, %p2797_p13  ;;  %p2849_p3 = scmp.lt.s32.totalorder %s2847_s21, %s2840_s14 }
  0x7a   : > { %p2844_p1 = pneg %p2843_p8  ;;  %p2850_p12 = por %p2849_p3, %p2848_p7 }
  0x7c   : > { %p2851_p5 = pnand %p2850_p12, %p2844_p1 }
  0x7e   : > { %2854 = shalt.err (!%p2851_p5)
}
  0x7f   : > { %s4057_s11 = smov 4   ;;  %s4058_s22 = smov 64  }
  0x80   : > { %2525 = dma.hbm_to_vmem [thread:$0]  (!%p3289_p11), %s3298_s8, 256, %s3333_s7, %s3300_s4, %s4058_s22, %s4058_s22, %s4057_s11  }
  0x81   : > { %s3447_s16 = scalar_lea.sflag [#allocation5], %s313_s6  ;;  %s2855_s30 = scalar_lea.hbm %s3406_s25, 128 }
  0x82   : > { %p2856_p13 = scmp.ne.s32.totalorder %s3406_s25, %s2855_s30  ;;  %p2857_p7 = pneg %p3414_p4 }
  0x83   : > { %s2860_s3 = scalar_lea.hbm %s4054_s0, 256  ;;  %p2861_p9 = scmp.lt.u32.totalorder %s3406_s25, %s4054_s0 }
  0x84   : > { %p2858_p1 = pnand %p2857_p7, %p2856_p13  ;;  %p2862_p11 = scmp.lt.u32.totalorder %s2860_s3, %s2855_s30 }
  0x85   : > { %p2864_p0 = scmp.lt.u32.totalorder %s2855_s30, %s3406_s25 }
  0x86   : > { %p2859_p10 = pneg %p2858_p1  ;;  %p2863_p2 = por %p2862_p11, %p2861_p9 }
  0x88   : > { %p2865_p6 = por %p2864_p0, %p2863_p2 }
  0x8a   : > { %p2866_p8 = pnand %p2865_p6, %p2859_p10 }
  0x8c   : > { %2869 = shalt.err (!%p2866_p8)
}
  0x8d   : > { %s2870_s4 = scalar_lea.vmem %s3408_s17, 128  ;;  %s3101_s8 = smov [#allocation4]  }
  0x8e   : > { %p2871_p3 = scmp.ne.s32.totalorder %s3408_s17, %s2870_s4  ;;  %s2875_s7 = sshll.u32 %s3101_s8, 4  ;;  %s2876_s7 = int_to_ptr.vmem [resolvable:$false] %s2875_s7 }
  0x8f   : > { %s2877_s6 = scalar_lea.vmem %s2876_s7, 256  ;;  %p2878_p13 = scmp.lt.s32.totalorder %s3408_s17, %s2876_s7 }
  0x90   : > { %p2873_p12 = pnand %p2871_p3, %p2857_p7  ;;  %p2879_p1 = scmp.lt.s32.totalorder %s2877_s6, %s2870_s4 }
  0x92   : > { %p2874_p5 = pneg %p2873_p12  ;;  %p2880_p9 = por %p2879_p1, %p2878_p13 }
  0x94   : > { %p2881_p11 = pnand %p2880_p9, %p2874_p5 }
  0x96   : > { %2884 = shalt.err (!%p2881_p11)
}
  0x97   : > { %2519 = dma.hbm_to_vmem [thread:$0]  (!%p3414_p4), %s3406_s25, 128, %s3408_s17, %s3447_s16, %s4058_s22, %s4058_s22, %s4057_s11  }
  0x98   : > { %s4059_s30 = sld [smem:[#allocation28_spill]] }
  0x9e   : > { %p4060_p7 = scmp.ne.s32.totalorder %s4059_s30, 0 }
  0x9f   : > { %s404_s26 = sand.u32 (!%p4060_p7), 1, %s3071_s12   ;;  %p4061_p10 = scmp.ne.s32.totalorder (!%p4060_p7), %s4047_s20, 0 }
  0xa0   : > { %402 = sbr.rel (%p4060_p7) target bundleno = 11855 (0x2e4f), region = 44  ;;  %s3481_s14 = sshll.u32 (!%p4060_p7), %s404_s26, 3 }
  0xa1   : > { %s405_s3 = scalar_lea.sflag (!%p4060_p7), [#allocation5], %s404_s26 }
  0xa7   : > { %3026 = dma.done.wait (%p4061_p10), %s405_s3, 128  }
  0xa8   : > { %3028 = vsyncadd (%p4061_p10), %s405_s3, 4294967168  ;;  %s4062_s23 = sld [smem:[#allocation18_spill]]  ;;  %s4063_s17 = sld [smem:[#allocation25_spill]] }
  0xa9   : > { %s4008_s25 = sand.u32 1, %s3233_s19  }
  0xaa   : > { %s414_s16 = scalar_lea.sflag [#allocation8], %s4008_s25 }
  0xae   : > { %s415_s11 = sand.u32 1, %s4062_s23   ;;  %p4064_p4 = scmp.ne.s32.totalorder %s4063_s17, 0 }
  0xaf   : > { %s2251_s22 = sshll.u32 %s415_s11, 4 }
  0xb0   : > { %s417_s21 = scalar_lea.vmem [#allocation7], %s2251_s22 }
  0xb1   : > { %3030 = dma.done.wait (%p4064_p4), %s414_s16, 512  }
  0xb2   : > { %3032 = vsyncadd (%p4064_p4), %s414_s16, 4294966784  ;;  %s4065_s4 = sld [smem:[#allocation22_spill]]  ;;  %s4011_s20 = sand.u32 1, %s3047_s28   ;;  %v512_v0 = vld [vmem:[%s417_s21] sm:$0xf] }
  0xb3   : > { %s3498_s8 = sshll.u32 %s415_s11, 1  ;;  %s2253_s7 = sshll.u32 %s4011_s20, 4  ;;  %v513_v1 = vld [vmem:[%s417_s21 + $0x4] sm:$0xf]  ;;  %v514_v2 = vld [vmem:[%s417_s21 + $0x8] sm:$0xf] }
  0xb4   : > { %s4066_s26 = sld [smem:[#allocation36_spill]]  ;;  %s4067_s25 = sld [smem:[#allocation37_spill]]  ;;  %v515_v3 = vld [vmem:[%s417_s21 + $0xc] sm:$0xf] }
  0xb5   : > { %s4068_s13 = sld [smem:[#allocation38_spill]]  ;;  %s426_s11 = scalar_lea.vmem [#allocation9], %s2251_s22 }
  0xb6   : > { %v3512_v4 = vld [vmem:[%s426_s11] sm:$0xf]  ;;  %v3514_v5 = vld [vmem:[%s426_s11 + $0x4] sm:$0xf]  ;;  %v3516_v6 = vld [vmem:[%s426_s11 + $0x8] sm:$0xf] }
  0xb7   : > { %v3518_v7 = vld [vmem:[%s426_s11 + $0xc] sm:$0xf]  ;;  %s489_s6 = scalar_lea.vmem [#allocation13], %s3498_s8  ;;  %s4069_s0 = sld [smem:[#allocation21_spill]] }
  0xb8   : > { %p495_p2 = scmp.lt.s32.totalorder %s4065_s4, 1 }
  0xba   : > { %s4113_s4 = smov (!%p495_p2, %s4065_s4), 1 }
  0xbb   : > { %s497_s3 = scalar_lea.vmem %s4066_s26, %s4113_s4  ;;  %s2256_s23 = sshll.u32 %s4113_s4, 1 }
  0xbc   : > { %s501_s24 = scalar_lea.vmem %s4067_s25, %s2256_s23  ;;  %s505_s12 = scalar_lea.vmem %s4068_s13, %s2256_s23  ;;  %v2259_v8 = vld [vmem:[%s497_s3] ss:$0 sm:$0xff] }
  0xbd   : > { %s3520_s4 = scalar_lea.vmem [#allocation10], %s2253_s7  ;;  %s482_s25 = scalar_lea.vmem [#allocation11], %s3498_s8 }
  0xbe   : > { %p2258_p0 = scmp.ne.s32.totalorder %s4069_s0, 0 }
  0xbf   : > { %v525_v9 = vld [vmem:[%s501_s24] sm:$0x3] (!%p2258_p0)  ;;  %vm526_vm0 = vcmask (!%p2258_p0), 254976  }
  0xc0   : > { %524 = sbr.rel (%p2258_p0) target bundleno = 199 (0xc7), region = 60  ;;  %v528_v10 = vld [vmem:[%s505_s12] sm:$0x3] (!%p2258_p0)  ;;  %527 = vst.msk [vmem:[#allocation2] sm:$0x3] (!%p2258_p0), %vm526_vm0, %v525_v9 }
  0xc1   : > { %529 = vst.msk [vmem:[#allocation3] sm:$0x3] (!%p2258_p0), %vm526_vm0, %v528_v10 }
  0xc7 PF: > { %v2261_v11 = vcombine.low %v512_v0, %v513_v1  ;;  %v3102_v12 = vmov 0.0   ;;  %vm3103_vm1 = vmmov 0   ;;  %v2262_v13 = vcombine.low %v514_v2, %v515_v3  ;;  %s4070_s2 = scalar_lea.vmem [#allocation4], %s3481_s14  ;;  %s4071_s12 = sld [smem:[#allocation22_spill]] }
  0xc8   : > { %2368 = vmatprep.subr.bf16.mxu0 %v3102_v12  ;;  %2372 = vmatprep.mubr.msk.bf16.mxu0 %vm3103_vm1, %v3102_v12  ;;  %v2666_v14 = vld [vmem:[%s4070_s2] sm:$0xff]   ;;  %vm555_vm2 = vcmask 261120  }
  0xc9   : > { %2369 = vmatpush3.bf16.msra.mxu0 %v2261_v11 }
  0xca   : > { %2370 = vmatprep.subr.bf16.mxu0 %v3102_v12 }
  0xcd   : > { %2371 = vmatpush3.bf16.msra.mxu0 %v2262_v13  ;;  %p2264_p6 = scmp.ne.s32.totalorder %s4071_s12, 0 }
  0xce   : > { %v3535_v21 = vcombine.low (!%p2264_p6), %v3512_v4, %v3514_v5  ;;  %v3104_v22 = vmov (!%p2264_p6), 0.0   ;;  %vm3105_vm3 = vmmov (!%p2264_p6), 0   ;;  %v3543_v23 = vcombine.low (!%p2264_p6), %v3516_v6, %v3518_v7  ;;  %v604_v24 = vld [vmem:[#allocation2] sm:$0x3] (!%p2264_p6)  ;;  %s3106_s13 = smov (!%p2264_p6), 32   ;;  %s3107_s14 = smov (!%p2264_p6), 64  }
  0xcf   : > { %2376 = vmatprep.subr.bf16.mxu0 (!%p2264_p6), %v3104_v22  ;;  %2384 = vmatprep.subr.bf16.mxu1 (!%p2264_p6), %v3104_v22  ;;  %v606_v25 = vpack.c.bf16 (!%p2264_p6), %v604_v24, %v604_v24  ;;  %v605_v32 = vld [vmem:[#allocation3] sm:$0x3] (!%p2264_p6)  ;;  %vm1239_vm4 = vcmask (!%p2264_p6), 1041408   ;;  %vm1241_vm5 = vcmask (!%p2264_p6), 1043456   ;;  %vm1243_vm6 = vcmask (!%p2264_p6), 1045504   ;;  %s3108_s24 = smov (!%p2264_p6), 96  }
  0xd0   : > { %2373 = vmatmul.mubr.msk.bf16.vlgmr.msra.gmra.mrb[0].mxu0 %vm555_vm2, %v2666_v14  ;;  %2385 = vmatpush3.bf16.msra.mxu1 (!%p2264_p6), %v3535_v21  ;;  %vm1262_vm7 = vcmask (!%p2264_p6), 261126  }
  0xd1   : > { %2380 = vmatprep.mubr.msk.bf16.mxu0 (!%p2264_p6), %vm3105_vm3, %v3104_v22  ;;  %2377 = vmatpush3.bf16.msra.mxu0 (!%p2264_p6), %v3535_v21 }
  0xd2   : > { %2378 = vmatprep.subr.bf16.mxu0 (!%p2264_p6), %v3104_v22  ;;  %2386 = vmatprep.subr.bf16.mxu1 (!%p2264_p6), %v3104_v22 }
  0xd3   : > { %2388 = vmatprep.mubr.msk.bf16.mxu1 (!%p2264_p6), %vm3105_vm3, %v3104_v22 }
  0xd4   : > { %2387 = vmatpush3.bf16.msra.mxu1 (!%p2264_p6), %v3543_v23 }
  0xd5   : > { %2379 = vmatpush3.bf16.msra.mxu0 (!%p2264_p6), %v3543_v23  ;;  %2400 = vmatprep.subr.bf16.mxu1 (!%p2264_p6), %v3104_v22 }
  0xd6   : > { %2392 = vmatprep.subr.bf16.mxu0 (!%p2264_p6), %v3104_v22 }
 0x1a0   : > { %603 = sbr.rel (%p2264_p6) target bundleno = 6080 (0x17c0), region = 64 }
 0x1a3   : > { %v593_v15 = vpop.f32.mrb[0].mxu0 }
 0x1a4   : > { %v3528_v16 = vadd.f32 %v2259_v8, %v593_v15  ;;  %v2374_v17 = vpop.f32.mrb[1].mxu0 }
 0x1a5   : > { %v596_v18 = vpop.f32.mrb[2].mxu0 }
 0x1a6   : > { %v3530_v19 = vadd.f32 %v2259_v8, %v596_v18  ;;  %v2375_v20 = vpop.f32.mrb[3].mxu0  ;;  %2381 = vmatmul.mubr.msk.bf16.vlgmr.msra.gmra.mrb[0].mxu0 (!%p2264_p6), %vm555_vm2, %v606_v25 }
 0x1a7   : > { %2393 = vmatpush3.bf16.msra.mxu0 %v3535_v21  ;;  %2396 = vmatprep.mubr.msk.bf16.mxu0 %vm3105_vm3, %v3104_v22 }
 0x1a8   : > { %2394 = vmatprep.subr.bf16.mxu0 %v3104_v22 }
 0x1ab   : > { %2395 = vmatpush3.bf16.msra.mxu0 %v3543_v23 }
 0x1ac   : > { %2408 = vmatprep.subr.bf16.mxu0 %v3104_v22 }
 0x279   : > { %v656_v26 = vpop.f32.mrb[0].mxu0 }
 0x27a   : > { %v662_v27 = vadd.f32 %v656_v26, %v3528_v16  ;;  %v2382_v28 = vpop.f32.mrb[1].mxu0 }
 0x27b   : > { %v659_v29 = vpop.f32.mrb[2].mxu0 }
 0x27c   : > { %2667 = vtanh.f32 %v662_v27  ;;  %v2383_v30 = vpop.f32.mrb[3].mxu0  ;;  %v2268_v33 = vmul.f32 -1.442695, %v662_v27 }
 0x27e   : > { %2669 = vpow2.f32 %v2268_v33 }
 0x286   : > { %v2668_v31 = vpop.eup %2667 }
 0x287   : > { %676 = vrot.lane.b32.xlu0 %v2668_v31, %s3106_s13 }
 0x288   : > { %v2670_v34 = vpop.eup %2669 }
 0x289   : > { %v666_v35 = vadd.f32 1.0, %v2670_v34 }
 0x28b   : > { %671 = vrot.lane.b32.xlu0 %v605_v32, %s3106_s13  ;;  %2671 = vrcp.f32 %v666_v35 }
 0x295   : > { %v2672_v36 = vpop.eup %2671 }
 0x2f9   : > { %v677_v37 = vpop.permute.xlu0 %676 }
 0x2fa   : > { %v679_v38 = vmul.f32 %v2672_v36, %v677_v37 }
 0x2fc   : > { %681 = vrot.lane.b32.xlu1 %v679_v38, %s3106_s13 }
 0x2fd   : > { %v672_v39 = vpop.permute.xlu0 %671 }
 0x2fe   : > { %v674_v40 = vmul.f32 %v2672_v36, %v672_v39 }
 0x36e   : > { %v682_v41 = vpop.permute.xlu1 %681 }
 0x36f   : > { %v684_v42 = vadd.f32 %v682_v41, %v674_v40 }
 0x371   : > { %2673 = vtanh.f32 %v684_v42  ;;  %v750_v61 = vrot.slane %v684_v42, 6 }
 0x37b   : > { %v2674_v43 = vpop.eup %2673 }
 0x37c   : > { %687 = vrot.lane.b32.xlu1 %v2674_v43, %s3106_s13 }
 0x3ee   : > { %v688_v44 = vpop.permute.xlu1 %687 }
 0x3ef   : > { %v3567_v45 = vmul.f32 %v2672_v36, %v688_v44 }
 0x3f1   : > { %v691_v46 = vpack.c.bf16 %v3567_v45, %v3567_v45 }
 0x3f3   : > { %693 = vrot.lane.b32.xlu0 %v691_v46, %s3107_s14 }
 0x465   : > { %v694_v47 = vpop.permute.xlu0 %693 }
 0x466   : > { %2389 = vmatmul.mubr.msk.bf16.vlgmr.msra.gmra.mrb[0].mxu1 %vm555_vm2, %v694_v47 }
 0x467   : > { %2401 = vmatpush3.bf16.msra.mxu1 %v3535_v21  ;;  %2404 = vmatprep.mubr.msk.bf16.mxu1 %vm3105_vm3, %v3104_v22 }
 0x468   : > { %2402 = vmatprep.subr.bf16.mxu1 %v3104_v22 }
 0x46b   : > { %2403 = vmatpush3.bf16.msra.mxu1 %v3543_v23 }
 0x46c   : > { %2416 = vmatprep.subr.bf16.mxu1 %v3104_v22 }
 0x539   : > { %v732_v48 = vpop.f32.mrb[0].mxu1 }
 0x53a   : > { %v739_v49 = vrot.slane %v732_v48, 6  ;;  %v2390_v50 = vpop.f32.mrb[1].mxu1 }
 0x53b   : > { %v735_v51 = vpop.f32.mrb[2].mxu1 }
 0x53c   : > { %v741_v52 = vadd.f32 %v739_v49, %v3528_v16  ;;  %v2391_v53 = vpop.f32.mrb[3].mxu1 }
 0x53e   : > { %2675 = vtanh.f32 %v741_v52  ;;  %v2270_v55 = vmul.f32 -1.442695, %v741_v52 }
 0x540   : > { %2677 = vpow2.f32 %v2270_v55 }
 0x548   : > { %v2676_v54 = vpop.eup %2675 }
 0x549   : > { %754 = vrot.lane.b32.xlu1 %v2676_v54, %s3106_s13 }
 0x54a   : > { %v2678_v56 = vpop.eup %2677 }
 0x54b   : > { %v745_v57 = vadd.f32 1.0, %v2678_v56 }
 0x54d   : > { %2679 = vrcp.f32 %v745_v57 }
 0x557   : > { %v2680_v58 = vpop.eup %2679 }
 0x558   : > { %v752_v62 = vmul.f32 %v2680_v58, %v750_v61 }
 0x5bb   : > { %v755_v59 = vpop.permute.xlu1 %754 }
 0x5bc   : > { %v757_v60 = vmul.f32 %v2680_v58, %v755_v59 }
 0x5be   : > { %759 = vrot.lane.b32.xlu0 %v757_v60, %s3106_s13 }
 0x630   : > { %v760_v63 = vpop.permute.xlu0 %759 }
 0x631   : > { %v762_v0 = vadd.f32 %v760_v63, %v752_v62 }
 0x633   : > { %2681 = vtanh.f32 %v762_v0  ;;  %v829_v29 = vrot.slane %v762_v0, 6 }
 0x63d   : > { %v2682_v1 = vpop.eup %2681 }
 0x63e   : > { %765 = vrot.lane.b32.xlu1 %v2682_v1, %s3106_s13 }
 0x6b0   : > { %v766_v2 = vpop.permute.xlu1 %765 }
 0x6b1   : > { %v768_v3 = vmul.f32 %v2680_v58, %v766_v2 }
 0x6b3   : > { %v769_v8 = vpack.c.bf16 %v768_v3, %v768_v3  ;;  %v1240_v36 = vsel %vm1239_vm4, %v3567_v45, %v768_v3 }
 0x6b5   : > { %v771_v9 = vrot.slane %v769_v8, 1 }
 0x6b7   : > { %772 = vrot.lane.b32.xlu0 %v771_v9, %s3107_s14 }
 0x729   : > { %v773_v10 = vpop.permute.xlu0 %772 }
 0x72a   : > { %2397 = vmatmul.mubr.msk.bf16.vlgmr.msra.gmra.mrb[4].mxu0 %vm555_vm2, %v773_v10 }
 0x72b   : > { %2409 = vmatpush3.bf16.msra.mxu0 %v3535_v21  ;;  %2412 = vmatprep.mubr.msk.bf16.mxu0 %vm3105_vm3, %v3104_v22 }
 0x72c   : > { %2410 = vmatprep.subr.bf16.mxu0 %v3104_v22 }
 0x72f   : > { %2411 = vmatpush3.bf16.msra.mxu0 %v3543_v23 }
 0x730   : > { %2424 = vmatprep.subr.bf16.mxu0 %v3104_v22 }
 0x7fd   : > { %v811_v11 = vpop.f32.mrb[4].mxu0 }
 0x7fe   : > { %v818_v12 = vrot.slane %v811_v11, 4  ;;  %v2398_v13 = vpop.f32.mrb[5].mxu0 }
 0x7ff   : > { %v814_v14 = vpop.f32.mrb[6].mxu0 }
 0x800   : > { %v820_v15 = vadd.f32 %v818_v12, %v3528_v16  ;;  %v2399_v17 = vpop.f32.mrb[7].mxu0 }
 0x802   : > { %2683 = vtanh.f32 %v820_v15  ;;  %v2272_v20 = vmul.f32 -1.442695, %v820_v15 }
 0x804   : > { %2685 = vpow2.f32 %v2272_v20 }
 0x80c   : > { %v2684_v18 = vpop.eup %2683 }
 0x80d   : > { %833 = vrot.lane.b32.xlu1 %v2684_v18, %s3106_s13 }
 0x80e   : > { %v2686_v24 = vpop.eup %2685 }
 0x80f   : > { %v824_v25 = vadd.f32 1.0, %v2686_v24 }
 0x811   : > { %2687 = vrcp.f32 %v824_v25 }
 0x81b   : > { %v2688_v26 = vpop.eup %2687 }
 0x81c   : > { %v831_v30 = vmul.f32 %v2688_v26, %v829_v29 }
 0x87f   : > { %v834_v27 = vpop.permute.xlu1 %833 }
 0x880   : > { %v836_v28 = vmul.f32 %v2688_v26, %v834_v27 }
 0x882   : > { %838 = vrot.lane.b32.xlu0 %v836_v28, %s3106_s13 }
 0x8f4   : > { %v839_v31 = vpop.permute.xlu0 %838 }
 0x8f5   : > { %v841_v32 = vadd.f32 %v839_v31, %v831_v30 }
 0x8f7   : > { %2689 = vtanh.f32 %v841_v32  ;;  %v908_v54 = vrot.slane %v841_v32, 6 }
 0x901   : > { %v2690_v33 = vpop.eup %2689 }
 0x902   : > { %844 = vrot.lane.b32.xlu1 %v2690_v33, %s3106_s13 }
 0x974   : > { %v845_v34 = vpop.permute.xlu1 %844 }
 0x975   : > { %v847_v35 = vmul.f32 %v2688_v26, %v845_v34 }
 0x977   : > { %v848_v37 = vpack.c.bf16 %v847_v35, %v847_v35  ;;  %v1242_v38 = vsel %vm1241_vm5, %v1240_v36, %v847_v35 }
 0x979   : > { %v850_v39 = vrot.slane %v848_v37, 2 }
 0x97b   : > { %851 = vrot.lane.b32.xlu0 %v850_v39, %s3107_s14 }
 0x9ed   : > { %v852_v40 = vpop.permute.xlu0 %851 }
 0x9ee   : > { %2405 = vmatmul.mubr.msk.bf16.vlgmr.msra.gmra.mrb[4].mxu1 %vm555_vm2, %v852_v40 }
 0x9ef   : > { %2417 = vmatpush3.bf16.msra.mxu1 %v3535_v21  ;;  %2420 = vmatprep.mubr.msk.bf16.mxu1 %vm3105_vm3, %v3104_v22 }
 0x9f0   : > { %2418 = vmatprep.subr.bf16.mxu1 %v3104_v22 }
 0x9f3   : > { %2419 = vmatpush3.bf16.msra.mxu1 %v3543_v23 }
 0x9f4   : > { %2432 = vmatprep.subr.bf16.mxu1 %v3104_v22 }
 0xac1   : > { %v890_v41 = vpop.f32.mrb[4].mxu1 }
 0xac2   : > { %v897_v42 = vrot.slane %v890_v41, 2  ;;  %v2406_v43 = vpop.f32.mrb[5].mxu1 }
 0xac3   : > { %v893_v44 = vpop.f32.mrb[6].mxu1 }
 0xac4   : > { %v899_v45 = vadd.f32 %v897_v42, %v3528_v16  ;;  %v2407_v46 = vpop.f32.mrb[7].mxu1 }
 0xac6   : > { %2691 = vtanh.f32 %v899_v45  ;;  %v2274_v48 = vmul.f32 -1.442695, %v899_v45 }
 0xac8   : > { %2693 = vpow2.f32 %v2274_v48 }
 0xad0   : > { %v2692_v47 = vpop.eup %2691 }
 0xad1   : > { %912 = vrot.lane.b32.xlu1 %v2692_v47, %s3106_s13 }
 0xad2   : > { %v2694_v49 = vpop.eup %2693 }
 0xad3   : > { %v903_v50 = vadd.f32 1.0, %v2694_v49 }
 0xad5   : > { %2695 = vrcp.f32 %v903_v50 }
 0xadf   : > { %v2696_v51 = vpop.eup %2695 }
 0xae0   : > { %v910_v55 = vmul.f32 %v2696_v51, %v908_v54 }
 0xb43   : > { %v913_v52 = vpop.permute.xlu1 %912 }
 0xb44   : > { %v915_v53 = vmul.f32 %v2696_v51, %v913_v52 }
 0xb46   : > { %917 = vrot.lane.b32.xlu0 %v915_v53, %s3106_s13 }
 0xbb8   : > { %v918_v56 = vpop.permute.xlu0 %917 }
 0xbb9   : > { %v920_v57 = vadd.f32 %v918_v56, %v910_v55 }
 0xbbb   : > { %2697 = vtanh.f32 %v920_v57  ;;  %v984_v18 = vrot.slane %v920_v57, 6 }
 0xbc5   : > { %v2698_v58 = vpop.eup %2697 }
 0xbc6   : > { %923 = vrot.lane.b32.xlu1 %v2698_v58, %s3106_s13 }
 0xc38   : > { %v924_v59 = vpop.permute.xlu1 %923 }
 0xc39   : > { %v926_v60 = vmul.f32 %v2696_v51, %v924_v59 }
 0xc3b   : > { %v927_v61 = vpack.c.bf16 %v926_v60, %v926_v60  ;;  %v3611_v62 = vsel %vm1243_vm6, %v1242_v38, %v926_v60 }
 0xc3d   : > { %v929_v63 = vrot.slane %v927_v61, 3 }
 0xc3f   : > { %930 = vrot.lane.b32.xlu0 %v929_v63, %s3107_s14 }
 0xcb1   : > { %v931_v0 = vpop.permute.xlu0 %930 }
 0xcb2   : > { %2413 = vmatmul.mubr.msk.bf16.vlgmr.msra.gmra.mrb[8].mxu0 %vm555_vm2, %v931_v0 }
 0xcb3   : > { %2425 = vmatpush3.bf16.msra.mxu0 %v3535_v21  ;;  %2428 = vmatprep.mubr.msk.bf16.mxu0 %vm3105_vm3, %v3104_v22 }
 0xcb4   : > { %2426 = vmatprep.subr.bf16.mxu0 %v3104_v22 }
 0xcb7   : > { %2427 = vmatpush3.bf16.msra.mxu0 %v3543_v23 }
 0xd85   : > { %v969_v1 = vpop.f32.mrb[8].mxu0 }
 0xd86   : > { %v975_v2 = vadd.f32 %v969_v1, %v3530_v19  ;;  %v2414_v3 = vpop.f32.mrb[9].mxu0 }
 0xd87   : > { %v972_v8 = vpop.f32.mrb[10].mxu0 }
 0xd88   : > { %2699 = vtanh.f32 %v975_v2  ;;  %v2415_v9 = vpop.f32.mrb[11].mxu0  ;;  %v2276_v11 = vmul.f32 -1.442695, %v975_v2 }
 0xd8a   : > { %2701 = vpow2.f32 %v2276_v11 }
 0xd92   : > { %v2700_v10 = vpop.eup %2699 }
 0xd93   : > { %988 = vrot.lane.b32.xlu1 %v2700_v10, %s3106_s13 }
 0xd94   : > { %v2702_v12 = vpop.eup %2701 }
 0xd95   : > { %v979_v13 = vadd.f32 1.0, %v2702_v12 }
 0xd97   : > { %2703 = vrcp.f32 %v979_v13 }
 0xda1   : > { %v2704_v14 = vpop.eup %2703 }
 0xda2   : > { %v986_v20 = vmul.f32 %v2704_v14, %v984_v18 }
 0xe05   : > { %v989_v15 = vpop.permute.xlu1 %988 }
 0xe06   : > { %v991_v17 = vmul.f32 %v2704_v14, %v989_v15 }
 0xe08   : > { %993 = vrot.lane.b32.xlu0 %v991_v17, %s3106_s13 }
 0xe7a   : > { %v994_v24 = vpop.permute.xlu0 %993 }
 0xe7b   : > { %v996_v25 = vadd.f32 %v994_v24, %v986_v20 }
 0xe7d   : > { %2705 = vtanh.f32 %v996_v25 }
 0xe87   : > { %v2706_v26 = vpop.eup %2705 }
 0xe88   : > { %999 = vrot.lane.b32.xlu1 %v2706_v26, %s3106_s13 }
 0xefa   : > { %v1000_v27 = vpop.permute.xlu1 %999 }
 0xefb   : > { %v3624_v28 = vmul.f32 %v2704_v14, %v1000_v27 }
 0xefd   : > { %v1003_v29 = vpack.c.bf16 %v3624_v28, %v3624_v28 }
 0xeff   : > { %1005 = vrot.lane.b32.xlu0 %v1003_v29, %s3107_s14 }
 0xf71   : > { %v1006_v30 = vpop.permute.xlu0 %1005 }
 0xf72   : > { %2421 = vmatmul.mubr.msk.bf16.vlgmr.msra.gmra.mrb[8].mxu1 %vm555_vm2, %v1006_v30 }
 0xf73   : > { %2433 = vmatpush3.bf16.msra.mxu1 %v3535_v21  ;;  %2436 = vmatprep.mubr.msk.bf16.mxu1 %vm3105_vm3, %v3104_v22 }
 0xf74   : > { %2434 = vmatprep.subr.bf16.mxu1 %v3104_v22 }
 0xf77   : > { %2435 = vmatpush3.bf16.msra.mxu1 %v3543_v23  ;;  %v1062_v23 = vrot.slane %v996_v25, 6 }
0x1045   : > { %v1044_v31 = vpop.f32.mrb[8].mxu1 }
0x1046   : > { %v1051_v32 = vrot.slane %v1044_v31, 6  ;;  %v2422_v33 = vpop.f32.mrb[9].mxu1 }
0x1047   : > { %v1047_v34 = vpop.f32.mrb[10].mxu1 }
0x1048   : > { %v1053_v35 = vadd.f32 %v1051_v32, %v3530_v19  ;;  %v2423_v36 = vpop.f32.mrb[11].mxu1 }
0x104a   : > { %2707 = vtanh.f32 %v1053_v35  ;;  %v2278_v38 = vmul.f32 -1.442695, %v1053_v35 }
0x104c   : > { %2709 = vpow2.f32 %v2278_v38 }
0x1054   : > { %v2708_v37 = vpop.eup %2707 }
0x1055   : > { %1066 = vrot.lane.b32.xlu1 %v2708_v37, %s3106_s13 }
0x1056   : > { %v2710_v21 = vpop.eup %2709 }
0x1057   : > { %v1057_v39 = vadd.f32 1.0, %v2710_v21 }
0x1059   : > { %2711 = vrcp.f32 %v1057_v39 }
0x1063   : > { %v2712_v40 = vpop.eup %2711 }
0x1064   : > { %v1064_v42 = vmul.f32 %v2712_v40, %v1062_v23 }
0x10c7   : > { %v1067_v22 = vpop.permute.xlu1 %1066 }
0x10c8   : > { %v1069_v41 = vmul.f32 %v2712_v40, %v1067_v22 }
0x10ca   : > { %1071 = vrot.lane.b32.xlu0 %v1069_v41, %s3106_s13 }
0x113c   : > { %v1072_v43 = vpop.permute.xlu0 %1071 }
0x113d   : > { %v1074_v44 = vadd.f32 %v1072_v43, %v1064_v42 }
0x113f   : > { %2713 = vtanh.f32 %v1074_v44  ;;  %v1141_v1 = vrot.slane %v1074_v44, 6 }
0x1149   : > { %v2714_v45 = vpop.eup %2713 }
0x114a   : > { %1077 = vrot.lane.b32.xlu1 %v2714_v45, %s3106_s13 }
0x11bc   : > { %v1078_v46 = vpop.permute.xlu1 %1077 }
0x11bd   : > { %v1080_v47 = vmul.f32 %v2712_v40, %v1078_v46 }
0x11bf   : > { %v1081_v48 = vpack.c.bf16 %v1080_v47, %v1080_v47  ;;  %v1245_v12 = vsel %vm1239_vm4, %v3624_v28, %v1080_v47 }
0x11c1   : > { %v1083_v49 = vrot.slane %v1081_v48, 1 }
0x11c3   : > { %1084 = vrot.lane.b32.xlu0 %v1083_v49, %s3107_s14 }
0x1235   : > { %v1085_v50 = vpop.permute.xlu0 %1084 }
0x1236   : > { %2429 = vmatmul.mubr.msk.bf16.vlgmr.msra.gmra.mrb[12].mxu0 %vm555_vm2, %v1085_v50 }
0x1309   : > { %v1123_v51 = vpop.f32.mrb[12].mxu0 }
0x130a   : > { %v1130_v52 = vrot.slane %v1123_v51, 4  ;;  %v2430_v53 = vpop.f32.mrb[13].mxu0 }
0x130b   : > { %v1126_v54 = vpop.f32.mrb[14].mxu0 }
0x130c   : > { %v1132_v55 = vadd.f32 %v1130_v52, %v3530_v19  ;;  %v2431_v56 = vpop.f32.mrb[15].mxu0 }
0x130e   : > { %2715 = vtanh.f32 %v1132_v55  ;;  %v2280_v58 = vmul.f32 -1.442695, %v1132_v55 }
0x1310   : > { %2717 = vpow2.f32 %v2280_v58 }
0x1318   : > { %v2716_v57 = vpop.eup %2715 }
0x1319   : > { %1145 = vrot.lane.b32.xlu1 %v2716_v57, %s3106_s13 }
0x131a   : > { %v2718_v59 = vpop.eup %2717 }
0x131b   : > { %v1136_v60 = vadd.f32 1.0, %v2718_v59 }
0x131d   : > { %2719 = vrcp.f32 %v1136_v60 }
0x1327   : > { %v2720_v61 = vpop.eup %2719 }
0x1328   : > { %v1143_v2 = vmul.f32 %v2720_v61, %v1141_v1 }
0x138b   : > { %v1146_v63 = vpop.permute.xlu1 %1145 }
0x138c   : > { %v1148_v0 = vmul.f32 %v2720_v61, %v1146_v63 }
0x138e   : > { %1150 = vrot.lane.b32.xlu0 %v1148_v0, %s3106_s13 }
0x1400   : > { %v1151_v3 = vpop.permute.xlu0 %1150 }
0x1401   : > { %v1153_v8 = vadd.f32 %v1151_v3, %v1143_v2 }
0x1403   : > { %2721 = vtanh.f32 %v1153_v8  ;;  %v1220_v35 = vrot.slane %v1153_v8, 6 }
0x140d   : > { %v2722_v9 = vpop.eup %2721 }
0x140e   : > { %1156 = vrot.lane.b32.xlu1 %v2722_v9, %s3106_s13 }
0x1480   : > { %v1157_v10 = vpop.permute.xlu1 %1156 }
0x1481   : > { %v1159_v11 = vmul.f32 %v2720_v61, %v1157_v10 }
0x1483   : > { %v1160_v13 = vpack.c.bf16 %v1159_v11, %v1159_v11  ;;  %v1246_v14 = vsel %vm1241_vm5, %v1245_v12, %v1159_v11 }
0x1485   : > { %v1162_v15 = vrot.slane %v1160_v13, 2 }
0x1487   : > { %1163 = vrot.lane.b32.xlu0 %v1162_v15, %s3107_s14 }
0x14f9   : > { %v1164_v17 = vpop.permute.xlu0 %1163 }
0x14fa   : > { %2437 = vmatmul.mubr.msk.bf16.vlgmr.msra.gmra.mrb[12].mxu1 %vm555_vm2, %v1164_v17 }
0x15cd   : > { %v1202_v18 = vpop.f32.mrb[12].mxu1 }
0x15ce   : > { %v1209_v20 = vrot.slane %v1202_v18, 2  ;;  %v2438_v24 = vpop.f32.mrb[13].mxu1 }
0x15cf   : > { %v1205_v25 = vpop.f32.mrb[14].mxu1 }
0x15d0   : > { %v1211_v26 = vadd.f32 %v1209_v20, %v3530_v19  ;;  %v2439_v27 = vpop.f32.mrb[15].mxu1 }
0x15d2   : > { %2723 = vtanh.f32 %v1211_v26  ;;  %v2282_v28 = vmul.f32 -1.442695, %v1211_v26 }
0x15d4   : > { %2725 = vpow2.f32 %v2282_v28 }
0x15dc   : > { %v2724_v29 = vpop.eup %2723 }
0x15dd   : > { %1224 = vrot.lane.b32.xlu1 %v2724_v29, %s3106_s13 }
0x15de   : > { %v2726_v30 = vpop.eup %2725 }
0x15df   : > { %v1215_v31 = vadd.f32 1.0, %v2726_v30 }
0x15e1   : > { %2727 = vrcp.f32 %v1215_v31 }
0x15eb   : > { %v2728_v32 = vpop.eup %2727 }
0x15ec   : > { %v1222_v36 = vmul.f32 %v2728_v32, %v1220_v35 }
0x164f   : > { %v1225_v33 = vpop.permute.xlu1 %1224 }
0x1650   : > { %v1227_v34 = vmul.f32 %v2728_v32, %v1225_v33 }
0x1652   : > { %1229 = vrot.lane.b32.xlu0 %v1227_v34, %s3106_s13 }
0x1656   : > { %1250 = vrot.lane.b32.xlu0 %v3611_v62, %s3107_s14 }
0x16c4   : > { %v1230_v37 = vpop.permute.xlu0 %1229 }
0x16c5   : > { %v1232_v38 = vadd.f32 %v1230_v37, %v1222_v36 }
0x16c7   : > { %2729 = vtanh.f32 %v1232_v38 }
0x16c8   : > { %v1251_v21 = vpop.permute.xlu0 %1250 }
0x16c9   : > { %1256 = vst.msk [vmem:[%s3520_s4] sm:$0xff] %vm555_vm2, %v1251_v21 }
0x16d1   : > { %v2730_v39 = vpop.eup %2729 }
0x16d2   : > { %1235 = vrot.lane.b32.xlu1 %v2730_v39, %s3106_s13 }
0x1744   : > { %v1236_v40 = vpop.permute.xlu1 %1235 }
0x1745   : > { %v1238_v22 = vmul.f32 %v2728_v32, %v1236_v40 }
0x1747   : > { %1259 = vrot.lane.b32.xlu0 %v1238_v22, %s3107_s14  ;;  %v1247_v41 = vsel %vm1243_vm6, %v1246_v14, %v1238_v22 }
0x1748   : > { %1252 = vrot.lane.b32.xlu1 %v1247_v41, %s3107_s14 }
0x174c   : > { %1265 = vrot.lane.b32.xlu1 %v1232_v38, %s3108_s24 }
0x17b9   : > { %v1260_v62 = vpop.permute.xlu0 %1259 }
0x17ba   : > { %1263 = vst.msk [vmem:[#allocation2 - $0x6] sm:$0xc0] %vm1262_vm7, %v1260_v62  ;;  %v1253_v23 = vpop.permute.xlu1 %1252 }
0x17bb   : > { %1257 = vst.msk [vmem:[%s3520_s4 + $0x8] sm:$0xff] %vm555_vm2, %v1253_v23 }
0x17be   : > { %v1266_v42 = vpop.permute.xlu1 %1265 }
0x17bf   : > { %1268 = vst.msk [vmem:[#allocation3 - $0x6] sm:$0xc0] %vm1262_vm7, %v1266_v42 }
0x17c0 PF: > { %s4072_s22 = sld [smem:[#allocation22_spill]] }
0x17c6   : > { %p2283_p8 = scmp.eq.s32.totalorder %s4072_s22, 0 }
0x17c7   : > { %v3666_v43 = vcombine.low (!%p2283_p8), %v3512_v4, %v3514_v5  ;;  %v3109_v44 = vmov (!%p2283_p8), 0.0   ;;  %vm3110_vm8 = vmmov (!%p2283_p8), 0   ;;  %v3674_v45 = vcombine.low (!%p2283_p8), %v3516_v6, %v3518_v7  ;;  %v1273_v46 = vld [vmem:[#allocation2] sm:$0x3] (!%p2283_p8)  ;;  %v1274_v50 = vld [vmem:[#allocation3] sm:$0x3] (!%p2283_p8) }
0x17c8   : > { %1272 = sbr.rel (%p2283_p8) target bundleno = 11758 (0x2dee), region = 68  ;;  %2440 = vmatprep.subr.bf16.mxu0 (!%p2283_p8), %v3109_v44  ;;  %2444 = vmatprep.mubr.msk.bf16.mxu0 (!%p2283_p8), %vm3110_vm8, %v3109_v44  ;;  %v1275_v4 = vpack.c.bf16 (!%p2283_p8), %v1273_v46, %v1273_v46  ;;  %s3111_s21 = smov (!%p2283_p8), 32   ;;  %v1343_v52 = vrot.slane (!%p2283_p8), %v1274_v50, 2  ;;  %vm1910_vm9 = vcmask (!%p2283_p8), 1041408   ;;  %vm1912_vm10 = vcmask (!%p2283_p8), 1043456  }
0x17c9   : > { %2441 = vmatpush3.bf16.msra.mxu0 (!%p2283_p8), %v3666_v43  ;;  %2448 = vmatprep.subr.bf16.mxu1 (!%p2283_p8), %v3109_v44  ;;  %s3112_s7 = smov (!%p2283_p8), 64   ;;  %vm1914_vm11 = vcmask (!%p2283_p8), 1045504   ;;  %s3113_s30 = smov (!%p2283_p8), 96   ;;  %vm1933_vm12 = vcmask (!%p2283_p8), 254976  }
0x17ca   : > { %2442 = vmatprep.subr.bf16.mxu0 (!%p2283_p8), %v3109_v44  ;;  %2449 = vmatpush3.bf16.msra.mxu1 (!%p2283_p8), %v3666_v43 }
0x17cb   : > { %2450 = vmatprep.subr.bf16.mxu1 (!%p2283_p8), %v3109_v44  ;;  %2452 = vmatprep.mubr.msk.bf16.mxu1 (!%p2283_p8), %vm3110_vm8, %v3109_v44 }
0x17cd   : > { %2443 = vmatpush3.bf16.msra.mxu0 (!%p2283_p8), %v3674_v45 }
0x17ce   : > { %2451 = vmatpush3.bf16.msra.mxu1 (!%p2283_p8), %v3674_v45  ;;  %2456 = vmatprep.subr.bf16.mxu0 (!%p2283_p8), %v3109_v44 }
0x17cf   : > { %2464 = vmatprep.subr.bf16.mxu1 %v3109_v44 }
0x17d0   : > { %2445 = vmatmul.mubr.msk.bf16.vlgmr.msra.gmra.mrb[0].mxu0 %vm555_vm2, %v1275_v4 }
0x17d1   : > { %2457 = vmatpush3.bf16.msra.mxu0 %v3666_v43  ;;  %2460 = vmatprep.mubr.msk.bf16.mxu0 %vm3110_vm8, %v3109_v44 }
0x17d2   : > { %2458 = vmatprep.subr.bf16.mxu0 %v3109_v44 }
0x17d5   : > { %2459 = vmatpush3.bf16.msra.mxu0 %v3674_v45 }
0x17d6   : > { %2472 = vmatprep.subr.bf16.mxu0 %v3109_v44 }
0x18a3   : > { %v1325_v5 = vpop.f32.mrb[0].mxu0 }
0x18a4   : > { %v1332_v6 = vrot.slane %v1325_v5, 2  ;;  %v2446_v7 = vpop.f32.mrb[1].mxu0 }
0x18a5   : > { %v1328_v47 = vpop.f32.mrb[2].mxu0 }
0x18a6   : > { %v1334_v48 = vadd.f32 %v1332_v6, %v3530_v19  ;;  %v2447_v49 = vpop.f32.mrb[3].mxu0 }
0x18a8   : > { %2731 = vtanh.f32 %v1334_v48  ;;  %v2287_v53 = vmul.f32 -1.442695, %v1334_v48 }
0x18aa   : > { %2733 = vpow2.f32 %v2287_v53 }
0x18b2   : > { %v2732_v51 = vpop.eup %2731 }
0x18b3   : > { %1349 = vrot.lane.b32.xlu0 %v2732_v51, %s3111_s21 }
0x18b4   : > { %v2734_v54 = vpop.eup %2733 }
0x18b5   : > { %v1338_v55 = vadd.f32 1.0, %v2734_v54 }
0x18b7   : > { %1344 = vrot.lane.b32.xlu0 %v1343_v52, %s3111_s21  ;;  %2735 = vrcp.f32 %v1338_v55 }
0x18c1   : > { %v2736_v56 = vpop.eup %2735 }
0x1925   : > { %v1350_v57 = vpop.permute.xlu0 %1349 }
0x1926   : > { %v1352_v58 = vmul.f32 %v2736_v56, %v1350_v57 }
0x1928   : > { %1354 = vrot.lane.b32.xlu1 %v1352_v58, %s3111_s21 }
0x1929   : > { %v1345_v59 = vpop.permute.xlu0 %1344 }
0x192a   : > { %v1347_v60 = vmul.f32 %v2736_v56, %v1345_v59 }
0x199a   : > { %v1355_v61 = vpop.permute.xlu1 %1354 }
0x199b   : > { %v1357_v63 = vadd.f32 %v1355_v61, %v1347_v60 }
0x199d   : > { %2737 = vtanh.f32 %v1357_v63  ;;  %v1424_v29 = vrot.slane %v1357_v63, 2 }
0x19a7   : > { %v2738_v0 = vpop.eup %2737 }
0x19a8   : > { %1360 = vrot.lane.b32.xlu1 %v2738_v0, %s3111_s21 }
0x1a1a   : > { %v1361_v1 = vpop.permute.xlu1 %1360 }
0x1a1b   : > { %v3698_v2 = vmul.f32 %v2736_v56, %v1361_v1 }
0x1a1d   : > { %v1364_v3 = vpack.c.bf16 %v3698_v2, %v3698_v2 }
0x1a1f   : > { %v1366_v8 = vrot.slane %v1364_v3, 3 }
0x1a21   : > { %1367 = vrot.lane.b32.xlu0 %v1366_v8, %s3112_s7 }
0x1a93   : > { %v1368_v9 = vpop.permute.xlu0 %1367 }
0x1a94   : > { %2453 = vmatmul.mubr.msk.bf16.vlgmr.msra.gmra.mrb[0].mxu1 %vm555_vm2, %v1368_v9 }
0x1a95   : > { %2465 = vmatpush3.bf16.msra.mxu1 %v3666_v43  ;;  %2468 = vmatprep.mubr.msk.bf16.mxu1 %vm3110_vm8, %v3109_v44 }
0x1a96   : > { %2466 = vmatprep.subr.bf16.mxu1 %v3109_v44 }
0x1a99   : > { %2467 = vmatpush3.bf16.msra.mxu1 %v3674_v45 }
0x1a9a   : > { %2480 = vmatprep.subr.bf16.mxu1 %v3109_v44 }
0x1b67   : > { %v1406_v10 = vpop.f32.mrb[0].mxu1 }
0x1b68   : > { %v1413_v11 = vrot.slane %v1406_v10, 4  ;;  %v2454_v12 = vpop.f32.mrb[1].mxu1 }
0x1b69   : > { %v1409_v13 = vpop.f32.mrb[2].mxu1 }
0x1b6a   : > { %v1415_v14 = vadd.f32 %v1413_v11, %v3530_v19  ;;  %v2455_v15 = vpop.f32.mrb[3].mxu1 }
0x1b6c   : > { %2739 = vtanh.f32 %v1415_v14  ;;  %v2289_v18 = vmul.f32 -1.442695, %v1415_v14 }
0x1b6e   : > { %2741 = vpow2.f32 %v2289_v18 }
0x1b76   : > { %v2740_v17 = vpop.eup %2739 }
0x1b77   : > { %1428 = vrot.lane.b32.xlu1 %v2740_v17, %s3111_s21 }
0x1b78   : > { %v2742_v20 = vpop.eup %2741 }
0x1b79   : > { %v1419_v24 = vadd.f32 1.0, %v2742_v20 }
0x1b7b   : > { %2743 = vrcp.f32 %v1419_v24 }
0x1b85   : > { %v2744_v25 = vpop.eup %2743 }
0x1b86   : > { %v1426_v28 = vmul.f32 %v2744_v25, %v1424_v29 }
0x1be9   : > { %v1429_v26 = vpop.permute.xlu1 %1428 }
0x1bea   : > { %v1431_v27 = vmul.f32 %v2744_v25, %v1429_v26 }
0x1bec   : > { %1433 = vrot.lane.b32.xlu0 %v1431_v27, %s3111_s21 }
0x1c5e   : > { %v1434_v30 = vpop.permute.xlu0 %1433 }
0x1c5f   : > { %v1436_v31 = vadd.f32 %v1434_v30, %v1426_v28 }
0x1c61   : > { %2745 = vtanh.f32 %v1436_v31  ;;  %v1503_v7 = vrot.slane %v1436_v31, 2 }
0x1c6b   : > { %v2746_v32 = vpop.eup %2745 }
0x1c6c   : > { %1439 = vrot.lane.b32.xlu1 %v2746_v32, %s3111_s21 }
0x1cde   : > { %v1440_v33 = vpop.permute.xlu1 %1439 }
0x1cdf   : > { %v3714_v34 = vmul.f32 %v2744_v25, %v1440_v33 }
0x1ce1   : > { %v1443_v35 = vpack.c.bf16 %v3714_v34, %v3714_v34 }
0x1ce3   : > { %v1445_v36 = vrot.slane %v1443_v35, 2 }
0x1ce5   : > { %1446 = vrot.lane.b32.xlu0 %v1445_v36, %s3112_s7 }
0x1d57   : > { %v1447_v37 = vpop.permute.xlu0 %1446 }
0x1d58   : > { %2461 = vmatmul.mubr.msk.bf16.vlgmr.msra.gmra.mrb[4].mxu0 %vm555_vm2, %v1447_v37 }
0x1d59   : > { %2473 = vmatpush3.bf16.msra.mxu0 %v3666_v43  ;;  %2476 = vmatprep.mubr.msk.bf16.mxu0 %vm3110_vm8, %v3109_v44 }
0x1d5a   : > { %2474 = vmatprep.subr.bf16.mxu0 %v3109_v44 }
0x1d5d   : > { %2475 = vmatpush3.bf16.msra.mxu0 %v3674_v45 }
0x1d5e   : > { %2488 = vmatprep.subr.bf16.mxu0 %v3109_v44 }
0x1e2b   : > { %v1485_v38 = vpop.f32.mrb[4].mxu0 }
0x1e2c   : > { %v1492_v21 = vrot.slane %v1485_v38, 6  ;;  %v2462_v39 = vpop.f32.mrb[5].mxu0 }
0x1e2d   : > { %v1488_v40 = vpop.f32.mrb[6].mxu0 }
0x1e2e   : > { %v1494_v22 = vadd.f32 %v1492_v21, %v3530_v19  ;;  %v2463_v41 = vpop.f32.mrb[7].mxu0 }
0x1e30   : > { %2747 = vtanh.f32 %v1494_v22  ;;  %v2291_v23 = vmul.f32 -1.442695, %v1494_v22 }
0x1e32   : > { %2749 = vpow2.f32 %v2291_v23 }
0x1e3a   : > { %v2748_v62 = vpop.eup %2747 }
0x1e3b   : > { %1507 = vrot.lane.b32.xlu1 %v2748_v62, %s3111_s21 }
0x1e3c   : > { %v2750_v42 = vpop.eup %2749 }
0x1e3d   : > { %v1498_v46 = vadd.f32 1.0, %v2750_v42 }
0x1e3f   : > { %2751 = vrcp.f32 %v1498_v46 }
0x1e49   : > { %v2752_v4 = vpop.eup %2751 }
0x1e4a   : > { %v1505_v47 = vmul.f32 %v2752_v4, %v1503_v7 }
0x1ead   : > { %v1508_v5 = vpop.permute.xlu1 %1507 }
0x1eae   : > { %v1510_v6 = vmul.f32 %v2752_v4, %v1508_v5 }
0x1eb0   : > { %1512 = vrot.lane.b32.xlu0 %v1510_v6, %s3111_s21 }
0x1f22   : > { %v1513_v48 = vpop.permute.xlu0 %1512 }
0x1f23   : > { %v1515_v49 = vadd.f32 %v1513_v48, %v1505_v47 }
0x1f25   : > { %2753 = vtanh.f32 %v1515_v49  ;;  %v1579_v10 = vrot.slane %v1515_v49, 2 }
0x1f2f   : > { %v2754_v50 = vpop.eup %2753 }
0x1f30   : > { %1518 = vrot.lane.b32.xlu1 %v2754_v50, %s3111_s21 }
0x1fa2   : > { %v1519_v51 = vpop.permute.xlu1 %1518 }
0x1fa3   : > { %v3730_v52 = vmul.f32 %v2752_v4, %v1519_v51 }
0x1fa5   : > { %v1522_v53 = vpack.c.bf16 %v3730_v52, %v3730_v52 }
0x1fa7   : > { %v1524_v54 = vrot.slane %v1522_v53, 1 }
0x1fa9   : > { %1525 = vrot.lane.b32.xlu0 %v1524_v54, %s3112_s7 }
0x201b   : > { %v1526_v55 = vpop.permute.xlu0 %1525 }
0x201c   : > { %2469 = vmatmul.mubr.msk.bf16.vlgmr.msra.gmra.mrb[4].mxu1 %vm555_vm2, %v1526_v55 }
0x201d   : > { %2481 = vmatpush3.bf16.msra.mxu1 %v3666_v43  ;;  %2484 = vmatprep.mubr.msk.bf16.mxu1 %vm3110_vm8, %v3109_v44 }
0x201e   : > { %2482 = vmatprep.subr.bf16.mxu1 %v3109_v44 }
0x2021   : > { %2483 = vmatpush3.bf16.msra.mxu1 %v3674_v45 }
0x2022   : > { %2496 = vmatprep.subr.bf16.mxu1 %v3109_v44 }
0x20ef   : > { %v1564_v56 = vpop.f32.mrb[4].mxu1 }
0x20f0   : > { %v1570_v57 = vadd.f32 %v1564_v56, %v3530_v19  ;;  %v2470_v58 = vpop.f32.mrb[5].mxu1 }
0x20f1   : > { %v1567_v59 = vpop.f32.mrb[6].mxu1 }
0x20f2   : > { %2755 = vtanh.f32 %v1570_v57  ;;  %v2471_v60 = vpop.f32.mrb[7].mxu1  ;;  %v2293_v63 = vmul.f32 -1.442695, %v1570_v57 }
0x20f4   : > { %2757 = vpow2.f32 %v2293_v63 }
0x20fc   : > { %v2756_v61 = vpop.eup %2755 }
0x20fd   : > { %1583 = vrot.lane.b32.xlu1 %v2756_v61, %s3111_s21 }
0x20fe   : > { %v2758_v0 = vpop.eup %2757 }
0x20ff   : > { %v1574_v1 = vadd.f32 1.0, %v2758_v0 }
0x2101   : > { %2759 = vrcp.f32 %v1574_v1 }
0x210b   : > { %v2760_v3 = vpop.eup %2759 }
0x210c   : > { %v1581_v11 = vmul.f32 %v2760_v3, %v1579_v10 }
0x216f   : > { %v1584_v8 = vpop.permute.xlu1 %1583 }
0x2170   : > { %v1586_v9 = vmul.f32 %v2760_v3, %v1584_v8 }
0x2172   : > { %1588 = vrot.lane.b32.xlu0 %v1586_v9, %s3111_s21 }
0x21e4   : > { %v1589_v19 = vpop.permute.xlu0 %1588 }
0x21e5   : > { %v1591_v12 = vadd.f32 %v1589_v19, %v1581_v11 }
0x21e7   : > { %2761 = vtanh.f32 %v1591_v12  ;;  %v1657_v37 = vrot.slane %v1591_v12, 2 }
0x21f1   : > { %v2762_v13 = vpop.eup %2761 }
0x21f2   : > { %1594 = vrot.lane.b32.xlu1 %v2762_v13, %s3111_s21 }
0x2264   : > { %v1595_v14 = vpop.permute.xlu1 %1594 }
0x2265   : > { %v3746_v15 = vmul.f32 %v2760_v3, %v1595_v14 }
0x2267   : > { %v1598_v17 = vpack.c.bf16 %v3746_v15, %v3746_v15 }
0x2269   : > { %1600 = vrot.lane.b32.xlu0 %v1598_v17, %s3112_s7 }
0x22db   : > { %v1601_v18 = vpop.permute.xlu0 %1600 }
0x22dc   : > { %2477 = vmatmul.mubr.msk.bf16.vlgmr.msra.gmra.mrb[8].mxu0 %vm555_vm2, %v1601_v18 }
0x22dd   : > { %2489 = vmatpush3.bf16.msra.mxu0 %v3666_v43  ;;  %2492 = vmatprep.mubr.msk.bf16.mxu0 %vm3110_vm8, %v3109_v44 }
0x22de   : > { %2490 = vmatprep.subr.bf16.mxu0 %v3109_v44 }
0x22e1   : > { %2491 = vmatpush3.bf16.msra.mxu0 %v3674_v45 }
0x23af   : > { %v1639_v20 = vpop.f32.mrb[8].mxu0 }
0x23b0   : > { %v1646_v24 = vrot.slane %v1639_v20, 2  ;;  %v2478_v25 = vpop.f32.mrb[9].mxu0 }
0x23b1   : > { %v1642_v26 = vpop.f32.mrb[10].mxu0 }
0x23b2   : > { %v1648_v27 = vadd.f32 %v1646_v24, %v3528_v16  ;;  %v2479_v29 = vpop.f32.mrb[11].mxu0 }
0x23b4   : > { %2763 = vtanh.f32 %v1648_v27  ;;  %v2295_v30 = vmul.f32 -1.442695, %v1648_v27 }
0x23b6   : > { %2765 = vpow2.f32 %v2295_v30 }
0x23be   : > { %v2764_v28 = vpop.eup %2763 }
0x23bf   : > { %1661 = vrot.lane.b32.xlu1 %v2764_v28, %s3111_s21 }
0x23c0   : > { %v2766_v31 = vpop.eup %2765 }
0x23c1   : > { %v1652_v32 = vadd.f32 1.0, %v2766_v31 }
0x23c3   : > { %2767 = vrcp.f32 %v1652_v32 }
0x23cd   : > { %v2768_v33 = vpop.eup %2767 }
0x23ce   : > { %v1659_v38 = vmul.f32 %v2768_v33, %v1657_v37 }
0x2431   : > { %v1662_v35 = vpop.permute.xlu1 %1661 }
0x2432   : > { %v1664_v36 = vmul.f32 %v2768_v33, %v1662_v35 }
0x2434   : > { %1666 = vrot.lane.b32.xlu0 %v1664_v36, %s3111_s21 }
0x24a6   : > { %v1667_v21 = vpop.permute.xlu0 %1666 }
0x24a7   : > { %v1669_v39 = vadd.f32 %v1667_v21, %v1659_v38 }
0x24a9   : > { %2769 = vtanh.f32 %v1669_v39 }
0x24b3   : > { %v2770_v40 = vpop.eup %2769 }
0x24b4   : > { %1672 = vrot.lane.b32.xlu1 %v2770_v40, %s3111_s21 }
0x2526   : > { %v1673_v22 = vpop.permute.xlu1 %1672 }
0x2527   : > { %v3761_v41 = vmul.f32 %v2768_v33, %v1673_v22 }
0x2529   : > { %v1676_v62 = vpack.c.bf16 %v3761_v41, %v3761_v41 }
0x252b   : > { %v1678_v23 = vrot.slane %v1676_v62, 3 }
0x252d   : > { %1679 = vrot.lane.b32.xlu0 %v1678_v23, %s3112_s7 }
0x259f   : > { %v1680_v42 = vpop.permute.xlu0 %1679 }
0x25a0   : > { %2485 = vmatmul.mubr.msk.bf16.vlgmr.msra.gmra.mrb[8].mxu1 %vm555_vm2, %v1680_v42 }
0x25a1   : > { %2497 = vmatpush3.bf16.msra.mxu1 %v3666_v43  ;;  %2500 = vmatprep.mubr.msk.bf16.mxu1 %vm3110_vm8, %v3109_v44 }
0x25a2   : > { %2498 = vmatprep.subr.bf16.mxu1 %v3109_v44 }
0x25a5   : > { %2499 = vmatpush3.bf16.msra.mxu1 %v3674_v45  ;;  %v1736_v45 = vrot.slane %v1669_v39, 2 }
0x2673   : > { %v1718_v46 = vpop.f32.mrb[8].mxu1 }
0x2674   : > { %v1725_v4 = vrot.slane %v1718_v46, 4  ;;  %v2486_v5 = vpop.f32.mrb[9].mxu1 }
0x2675   : > { %v1721_v6 = vpop.f32.mrb[10].mxu1 }
0x2676   : > { %v1727_v7 = vadd.f32 %v1725_v4, %v3528_v16  ;;  %v2487_v47 = vpop.f32.mrb[11].mxu1  ;;  %v1916_v6 = vsel %vm1910_vm9, %v3746_v15, %v3730_v52 }
0x2677   : > { %v1917_v47 = vsel %vm1912_vm10, %v1916_v6, %v3714_v34 }
0x2678   : > { %2771 = vtanh.f32 %v1727_v7  ;;  %v2297_v49 = vmul.f32 -1.442695, %v1727_v7 }
0x267a   : > { %2773 = vpow2.f32 %v2297_v49 }
0x2682   : > { %v2772_v48 = vpop.eup %2771 }
0x2683   : > { %1740 = vrot.lane.b32.xlu1 %v2772_v48, %s3111_s21  ;;  %v1918_v48 = vsel %vm1914_vm11, %v1917_v47, %v3698_v2 }
0x2684   : > { %v2774_v43 = vpop.eup %2773 }
0x2685   : > { %v1731_v50 = vadd.f32 1.0, %v2774_v43 }
0x2687   : > { %2775 = vrcp.f32 %v1731_v50 }
0x2691   : > { %v2776_v51 = vpop.eup %2775 }
0x2692   : > { %v1738_v54 = vmul.f32 %v2776_v51, %v1736_v45 }
0x26f5   : > { %v1741_v44 = vpop.permute.xlu1 %1740 }
0x26f6   : > { %v1743_v53 = vmul.f32 %v2776_v51, %v1741_v44 }
0x26f8   : > { %1745 = vrot.lane.b32.xlu0 %v1743_v53, %s3111_s21 }
0x276a   : > { %v1746_v55 = vpop.permute.xlu0 %1745 }
0x276b   : > { %v1748_v56 = vadd.f32 %v1746_v55, %v1738_v54 }
0x276d   : > { %2777 = vtanh.f32 %v1748_v56  ;;  %v1815_v20 = vrot.slane %v1748_v56, 2 }
0x2777   : > { %v2778_v57 = vpop.eup %2777 }
0x2778   : > { %1751 = vrot.lane.b32.xlu1 %v2778_v57, %s3111_s21 }
0x27ea   : > { %v1752_v58 = vpop.permute.xlu1 %1751 }
0x27eb   : > { %v3776_v59 = vmul.f32 %v2776_v51, %v1752_v58 }
0x27ed   : > { %v1755_v60 = vpack.c.bf16 %v3776_v59, %v3776_v59 }
0x27ef   : > { %v1757_v61 = vrot.slane %v1755_v60, 2 }
0x27f1   : > { %1758 = vrot.lane.b32.xlu0 %v1757_v61, %s3112_s7 }
0x2863   : > { %v1759_v63 = vpop.permute.xlu0 %1758 }
0x2864   : > { %2493 = vmatmul.mubr.msk.bf16.vlgmr.msra.gmra.mrb[12].mxu0 %vm555_vm2, %v1759_v63 }
0x2937   : > { %v1797_v0 = vpop.f32.mrb[12].mxu0 }
0x2938   : > { %v1804_v1 = vrot.slane %v1797_v0, 6  ;;  %v2494_v3 = vpop.f32.mrb[13].mxu0 }
0x2939   : > { %v1800_v8 = vpop.f32.mrb[14].mxu0 }
0x293a   : > { %v1806_v9 = vadd.f32 %v1804_v1, %v3528_v16  ;;  %v2495_v10 = vpop.f32.mrb[15].mxu0 }
0x293c   : > { %2779 = vtanh.f32 %v1806_v9  ;;  %v2299_v19 = vmul.f32 -1.442695, %v1806_v9 }
0x293e   : > { %2781 = vpow2.f32 %v2299_v19 }
0x2946   : > { %v2780_v11 = vpop.eup %2779 }
0x2947   : > { %1819 = vrot.lane.b32.xlu1 %v2780_v11, %s3111_s21 }
0x2948   : > { %v2782_v12 = vpop.eup %2781 }
0x2949   : > { %v1810_v13 = vadd.f32 1.0, %v2782_v12 }
0x294b   : > { %2783 = vrcp.f32 %v1810_v13 }
0x2955   : > { %v2784_v14 = vpop.eup %2783 }
0x2956   : > { %v1817_v24 = vmul.f32 %v2784_v14, %v1815_v20 }
0x29b9   : > { %v1820_v17 = vpop.permute.xlu1 %1819 }
0x29ba   : > { %v1822_v18 = vmul.f32 %v2784_v14, %v1820_v17 }
0x29bc   : > { %1824 = vrot.lane.b32.xlu0 %v1822_v18, %s3111_s21 }
0x2a2e   : > { %v1825_v25 = vpop.permute.xlu0 %1824 }
0x2a2f   : > { %v1827_v26 = vadd.f32 %v1825_v25, %v1817_v24 }
0x2a31   : > { %2785 = vtanh.f32 %v1827_v26  ;;  %v1891_v46 = vrot.slane %v1827_v26, 2 }
0x2a3b   : > { %v2786_v27 = vpop.eup %2785 }
0x2a3c   : > { %1830 = vrot.lane.b32.xlu1 %v2786_v27, %s3111_s21 }
0x2aae   : > { %v1831_v29 = vpop.permute.xlu1 %1830 }
0x2aaf   : > { %v1833_v28 = vmul.f32 %v2784_v14, %v1831_v29 }
0x2ab1   : > { %v1834_v30 = vpack.c.bf16 %v1833_v28, %v1833_v28 }
0x2ab3   : > { %v1836_v31 = vrot.slane %v1834_v30, 1 }
0x2ab5   : > { %1837 = vrot.lane.b32.xlu0 %v1836_v31, %s3112_s7 }
0x2b27   : > { %v1838_v32 = vpop.permute.xlu0 %1837 }
0x2b28   : > { %2501 = vmatmul.mubr.msk.bf16.vlgmr.msra.gmra.mrb[12].mxu1 %vm555_vm2, %v1838_v32 }
0x2bfb   : > { %v1876_v33 = vpop.f32.mrb[12].mxu1 }
0x2bfc   : > { %v1882_v35 = vadd.f32 %v1876_v33, %v3528_v16  ;;  %v2502_v36 = vpop.f32.mrb[13].mxu1 }
0x2bfd   : > { %v1879_v37 = vpop.f32.mrb[14].mxu1 }
0x2bfe   : > { %2787 = vtanh.f32 %v1882_v35  ;;  %v2503_v38 = vpop.f32.mrb[15].mxu1  ;;  %v2301_v39 = vmul.f32 -1.442695, %v1882_v35 }
0x2c00   : > { %2789 = vpow2.f32 %v2301_v39 }
0x2c08   : > { %v2788_v21 = vpop.eup %2787 }
0x2c09   : > { %1895 = vrot.lane.b32.xlu1 %v2788_v21, %s3111_s21 }
0x2c0a   : > { %v2790_v40 = vpop.eup %2789 }
0x2c0b   : > { %v1886_v22 = vadd.f32 1.0, %v2790_v40 }
0x2c0d   : > { %2791 = vrcp.f32 %v1886_v22 }
0x2c17   : > { %v2792_v62 = vpop.eup %2791 }
0x2c18   : > { %v1893_v4 = vmul.f32 %v2792_v62, %v1891_v46 }
0x2c7b   : > { %v1896_v23 = vpop.permute.xlu1 %1895 }
0x2c7c   : > { %v1898_v42 = vmul.f32 %v2792_v62, %v1896_v23 }
0x2c7e   : > { %1900 = vrot.lane.b32.xlu0 %v1898_v42, %s3111_s21 }
0x2cf0   : > { %v1901_v16 = vpop.permute.xlu0 %1900 }
0x2cf1   : > { %v1903_v5 = vadd.f32 %v1901_v16, %v1893_v4 }
0x2cf3   : > { %2793 = vtanh.f32 %v1903_v5 }
0x2cfd   : > { %v2794_v7 = vpop.eup %2793 }
0x2cfe   : > { %1906 = vrot.lane.b32.xlu1 %v2794_v7, %s3111_s21 }
0x2d02   : > { %1923 = vrot.lane.b32.xlu1 %v1918_v48, %s3112_s7 }
0x2d06   : > { %1936 = vrot.lane.b32.xlu1 %v1903_v5, %s3113_s30 }
0x2d70   : > { %v1907_v49 = vpop.permute.xlu1 %1906 }
0x2d71   : > { %v1909_v43 = vmul.f32 %v2792_v62, %v1907_v49 }
0x2d73   : > { %v1911_v50 = vsel %vm1910_vm9, %v1909_v43, %v1833_v28 }
0x2d74   : > { %v1924_v51 = vpop.permute.xlu1 %1923  ;;  %v1913_v52 = vsel %vm1912_vm10, %v1911_v50, %v3776_v59 }
0x2d75   : > { %1928 = vst.msk [vmem:[%s3520_s4 + $0x8] sm:$0xff] %vm555_vm2, %v1924_v51  ;;  %v1915_v15 = vsel %vm1914_vm11, %v1913_v52, %v3761_v41 }
0x2d76   : > { %1921 = vrot.lane.b32.xlu0 %v1915_v15, %s3112_s7 }
0x2d78   : > { %v1937_v34 = vpop.permute.xlu1 %1936 }
0x2d79   : > { %1939 = vst.msk [vmem:[#allocation3] sm:$0x3] %vm1933_vm12, %v1937_v34 }
0x2d7a   : > { %1930 = vrot.lane.b32.xlu0 %v1909_v43, %s3112_s7 }
0x2de8   : > { %v1922_v2 = vpop.permute.xlu0 %1921 }
0x2de9   : > { %1927 = vst.msk [vmem:[%s3520_s4] sm:$0xff] %vm555_vm2, %v1922_v2 }
0x2dec   : > { %v1931_v44 = vpop.permute.xlu0 %1930 }
0x2ded   : > { %1934 = vst.msk [vmem:[#allocation2] sm:$0x3] %vm1933_vm12, %v1931_v44 }
0x2dee PF: > { %s4073_s26 = sld [smem:[#allocation21_spill]] }
0x2df4   : > { %p2302_p3 = scmp.ne.s32.totalorder %s4073_s26, 1 }
0x2df5   : > { %v1944_v53 = vld [vmem:[#allocation2] sm:$0x3] (!%p2302_p3)  ;;  %vm1945_vm13 = vcmask (!%p2302_p3), 254976   ;;  %v1947_v41 = vld [vmem:[#allocation3] sm:$0x3] (!%p2302_p3) }
0x2df6   : > { %1943 = sbr.rel (%p2302_p3) target bundleno = 11773 (0x2dfd), region = 72  ;;  %1946 = vst.msk [vmem:[%s482_s25] sm:$0x3] (!%p2302_p3), %vm1945_vm13, %v1944_v53  ;;  %1948 = vst.msk [vmem:[%s489_s6] sm:$0x3] (!%p2302_p3), %vm1945_vm13, %v1947_v41 }
0x2dfd PF: > { %s4074_s3 = sld [smem:[#allocation22_spill]]  ;;  %s4075_s23 = sld [smem:[#allocation26_spill]] }
0x2dfe   : > { %s4076_s0 = sld [smem:[#allocation40_spill]]  ;;  %s1995_s12 = sshll.u32 %s482_s25, 4  ;;  %s1996_s12 = int_to_ptr.vmem [resolvable:$true] %s1995_s12 }
0x2dff   : > { %s4077_s13 = sand.u32 1, %s3233_s19   ;;  %s2885_s24 = scalar_lea.vmem %s1996_s12, 32 }
0x2e00   : > { %s3822_s14 = scalar_lea.sflag [#allocation12], %s4077_s13  ;;  %p2886_p12 = scmp.ne.s32.totalorder %s1996_s12, %s2885_s24 }
0x2e01   : > { %s3114_s22 = smov [#allocation11]  }
0x2e02   : > { %s2889_s21 = sshll.u32 %s3114_s22, 4  ;;  %s2890_s21 = int_to_ptr.vmem [resolvable:$false] %s2889_s21 }
0x2e03   : > { %s2310_s17 = sshll.u32 %s4074_s3, 5  ;;  %p4078_p5 = scmp.ne.s32.totalorder %s4075_s23, 0 }
0x2e04   : > { %s3816_s2 = scalar_lea.hbm %s4076_s0, %s2310_s17  ;;  %s2891_s7 = scalar_lea.vmem %s2890_s21, 64 }
0x2e05   : > { %p2887_p13 = pnand %p2886_p12, %p4078_p5  ;;  %p2892_p9 = scmp.lt.s32.totalorder %s1996_s12, %s2890_s21 }
0x2e06   : > { %p2893_p11 = scmp.lt.s32.totalorder %s2891_s7, %s2885_s24 }
0x2e07   : > { %p2888_p1 = pneg %p2887_p13 }
0x2e08   : > { %p2894_p7 = por %p2893_p11, %p2892_p9 }
0x2e0a   : > { %p2895_p10 = pnand %p2894_p7, %p2888_p1 }
0x2e0c   : > { %2898 = shalt.err (!%p2895_p10)
}
0x2e0d   : > { %s2899_s19 = scalar_lea.hbm %s3816_s2, 32  ;;  %s2903_s26 = scalar_lea.hbm %s4076_s0, 64 }
0x2e0e   : > { %p2900_p4 = scmp.ne.s32.totalorder %s3816_s2, %s2899_s19  ;;  %p2904_p6 = scmp.lt.u32.totalorder %s3816_s2, %s4076_s0 }
0x2e0f   : > { %p2905_p8 = scmp.lt.u32.totalorder %s2903_s26, %s2899_s19  ;;  %p2907_p12 = scmp.lt.u32.totalorder %s2899_s19, %s3816_s2 }
0x2e10   : > { %p2901_p2 = pnand %p2900_p4, %p4078_p5 }
0x2e11   : > { %p2906_p3 = por %p2905_p8, %p2904_p6 }
0x2e12   : > { %p2902_p0 = pneg %p2901_p2 }
0x2e13   : > { %p2908_p13 = por %p2907_p12, %p2906_p3 }
0x2e15   : > { %p2909_p1 = pnand %p2908_p13, %p2902_p0 }
0x2e17   : > { %2912 = shalt.err (!%p2909_p1)
}
0x2e18   : > { %s4079_s13 = sld [smem:[#allocation21_spill]]  ;;  %s1979_s21 = sshll.u32 %s3520_s4, 4  ;;  %s3846_s21 = int_to_ptr.vmem [resolvable:$true] %s1979_s21 }
0x2e19   : > { %2511 = dma.vmem_to_hbm [thread:$0]  (%p4078_p5), %s1996_s12, 32, %s3816_s2, %s3822_s14  }
0x2e1a   : > { %s2308_s19 = sshll.u32 %s4074_s3, 2  ;;  %s2008_s26 = sshll.u32 %s489_s6, 4  ;;  %s3858_s26 = int_to_ptr.vmem [resolvable:$true] %s2008_s26 }
0x2e1b   : > { %s4080_s2 = sld [smem:[#allocation41_spill]]  ;;  %s4081_s0 = sld [smem:[#allocation39_spill]] }
0x2e1c   : > { %s2913_s8 = scalar_lea.vmem %s3846_s21, 256  ;;  %p4083_p11 = scmp.ne.s32.totalorder %s4052_s1, 0 }
0x2e1d   : > { %p2914_p9 = scmp.ne.s32.totalorder %s3846_s21, %s2913_s8  ;;  %s3115_s6 = smov [#allocation10]  }
0x2e1e   : > { %s2306_s24 = sshll.u32 %s4079_s13, 1  ;;  %s2917_s20 = sshll.u32 %s3115_s6, 4  ;;  %s2918_s20 = int_to_ptr.vmem [resolvable:$false] %s2917_s20 }
0x2e1f   : > { %s1968_s22 = ssub.s32 1, %s2306_s24  ;;  %p2915_p7 = pnand %p2914_p9, %p4083_p11 }
0x2e20   : > { %s1969_s7 = smul.u32 %s4074_s3, %s1968_s22  ;;  %s2919_s3 = scalar_lea.vmem %s2918_s20, 512 }
0x2e21   : > { %s3856_s12 = scalar_lea.hbm %s4080_s2, %s2310_s17  ;;  %p2916_p10 = pneg %p2915_p7 }
0x2e22   : > { %s1970_s25 = sadd.s32 %s4079_s13, %s1969_s7  ;;  %s4082_s13 = sand.u32 1, %s3047_s28  }
0x2e23   : > { %s2307_s30 = sshll.u32 %s1970_s25, 1  ;;  %s3867_s7 = scalar_lea.sflag [#allocation6], %s4082_s13 }
0x2e24   : > { %s1976_s16 = sadd.s32 %s2308_s19, %s2307_s30  ;;  %p2920_p4 = scmp.lt.s32.totalorder %s3846_s21, %s2918_s20 }
0x2e25   : > { %s2309_s24 = sshll.u32 %s1976_s16, 7  ;;  %p2921_p2 = scmp.lt.s32.totalorder %s2919_s3, %s2913_s8 }
0x2e26   : > { %s3863_s9 = scalar_lea.hbm %s4081_s0, %s2309_s24 }
0x2e27   : > { %p2922_p0 = por %p2921_p2, %p2920_p4 }
0x2e29   : > { %p2923_p6 = pnand %p2922_p0, %p2916_p10 }
0x2e2b   : > { %2926 = shalt.err (!%p2923_p6)
}
0x2e2c   : > { %s2927_s17 = scalar_lea.hbm %s3863_s9, 256  ;;  %s2931_s30 = scalar_lea.hbm %s4081_s0, 1024 }
0x2e2d   : > { %p2928_p8 = scmp.ne.s32.totalorder %s3863_s9, %s2927_s17  ;;  %p2932_p13 = scmp.lt.u32.totalorder %s3863_s9, %s4081_s0 }
0x2e2e   : > { %p2933_p1 = scmp.lt.u32.totalorder %s2931_s30, %s2927_s17  ;;  %p2935_p7 = scmp.lt.u32.totalorder %s2927_s17, %s3863_s9 }
0x2e2f   : > { %p2929_p3 = pnand %p2928_p8, %p4083_p11 }
0x2e30   : > { %p2934_p9 = por %p2933_p1, %p2932_p13 }
0x2e31   : > { %p2930_p12 = pneg %p2929_p3 }
0x2e32   : > { %p2936_p10 = por %p2935_p7, %p2934_p9 }
0x2e34   : > { %p2937_p4 = pnand %p2936_p10, %p2930_p12 }
0x2e36   : > { %2940 = shalt.err (!%p2937_p4)
}
0x2e37   : > { %s3116_s24 = smov 128   ;;  %s3117_s4 = smov 8  }
0x2e38   : > { %2510 = dma.vmem_to_hbm [thread:$0]  (%p4083_p11), %s3846_s21, 256, %s3863_s9, %s3867_s7, %s3116_s24, %s3116_s24, %s3117_s4  }
0x2e39   : > { %s2941_s22 = scalar_lea.vmem %s3858_s26, 32  ;;  %s3118_s13 = smov [#allocation13]  }
0x2e3a   : > { %p2942_p2 = scmp.ne.s32.totalorder %s3858_s26, %s2941_s22  ;;  %s2945_s8 = sshll.u32 %s3118_s13, 4  ;;  %s2946_s8 = int_to_ptr.vmem [resolvable:$false] %s2945_s8 }
0x2e3b   : > { %s2947_s6 = scalar_lea.vmem %s2946_s8, 64  ;;  %p2948_p8 = scmp.lt.s32.totalorder %s3858_s26, %s2946_s8 }
0x2e3c   : > { %p2943_p0 = pnand %p2942_p2, %p4078_p5  ;;  %p2949_p3 = scmp.lt.s32.totalorder %s2947_s6, %s2941_s22 }
0x2e3e   : > { %p2944_p6 = pneg %p2943_p0  ;;  %p2950_p12 = por %p2949_p3, %p2948_p8 }
0x2e40   : > { %p2951_p13 = pnand %p2950_p12, %p2944_p6 }
0x2e42   : > { %2954 = shalt.err (!%p2951_p13)
}
0x2e43   : > { %s2955_s9 = scalar_lea.hbm %s3856_s12, 32  ;;  %s2959_s7 = scalar_lea.hbm %s4080_s2, 64 }
0x2e44   : > { %p2956_p11 = scmp.ne.s32.totalorder %s3856_s12, %s2955_s9  ;;  %p2960_p7 = scmp.lt.u32.totalorder %s3856_s12, %s4080_s2 }
0x2e45   : > { %p2961_p10 = scmp.lt.u32.totalorder %s2959_s7, %s2955_s9  ;;  %p2963_p2 = scmp.lt.u32.totalorder %s2955_s9, %s3856_s12 }
0x2e46   : > { %p2957_p1 = pnand %p2956_p11, %p4078_p5 }
0x2e47   : > { %p2962_p4 = por %p2961_p10, %p2960_p7 }
0x2e48   : > { %p2958_p9 = pneg %p2957_p1 }
0x2e49   : > { %p2964_p0 = por %p2963_p2, %p2962_p4 }
0x2e4b   : > { %p2965_p6 = pnand %p2964_p0, %p2958_p9 }
0x2e4d   : > { %2968 = shalt.err (!%p2965_p6)
}
0x2e4e   : > { %2512 = dma.vmem_to_hbm [thread:$0]  (%p4078_p5), %s3858_s26, 32, %s3856_s12, %s3822_s14  }
0x2e4f PF: > { %p2537_p8 = scmp.ge.s32.totalorder %s3095_s18, 2  ;;  %s2020_s17 = sand.u32 1, %s3043_s27  }
0x2e50   : > { %p4084_p3 = scmp.ne.s32.totalorder %s4053_s15, 0  ;;  %s2021_s19 = scalar_lea.sflag [#allocation6], %s2020_s17 }
0x2e52   : > { %p2527_p12 = pnand %p2537_p8, %p4084_p3 }
0x2e54   : > { %3034 = dma.done.wait (!%p2527_p12), %s2021_s19, 256  }
0x2e55   : > { %3036 = vsyncadd (!%p2527_p12), %s2021_s19, 4294967040  ;;  %s4085_s25 = sadd.s32 4294967294, %s3095_s18   ;;  %s4086_s30 = sld [smem:[#allocation27_spill]] }
0x2e56   : > { %s2029_s16 = sand.u32 1, %s4085_s25  }
0x2e57   : > { %s2030_s23 = scalar_lea.sflag [#allocation12], %s2029_s16 }
0x2e5b   : > { %p4087_p13 = scmp.ne.s32.totalorder %s4086_s30, 0 }
0x2e5d   : > { %p2530_p11 = pnand %p2537_p8, %p4087_p13 }
0x2e5f   : > { %3038 = dma.done.wait (!%p2530_p11), %s2030_s23, 64  }
0x2e60   : > { %3040 = vsyncadd (!%p2530_p11), %s2030_s23, 4294967232  ;;  %s31_s18 = sadd.s32 1, %s3095_s18   ;;  %s4089_s30 = sld [smem:[#allocation18_spill]] }
0x2e61   : > { %p3922_p5 = scmp.ge.s32.totalorder %s31_s18, 6   ;;  %s4090_s15 = sld [smem:[#allocation31_spill]] }
0x2e62   : > { %s4091_s11 = sld [smem:[#allocation19_spill]]  ;;  %s4092_s12 = sld [smem:[#allocation20_spill]] }
0x2e63   : > { %s4093_s13 = sld [smem:[#allocation32_spill]]  ;;  %s4094_s26 = sld [smem:[#allocation23_spill]] }
0x2e64   : > { %s4095_s24 = sld [smem:[#allocation24_spill]]  ;;  %s4096_s16 = sld [smem:[#allocation29_spill]] }
0x2e65   : > { %s4097_s17 = sld [smem:[#allocation30_spill]]  ;;  %s4099_s27 = smov %s3047_s28 }
0x2e66   : > { %s4100_s28 = smov %s3051_s29  ;;  %s4101_s29 = smov %s3387_s5 }
0x2e67   : > { %s4102_s9 = smov %s3063_s10  ;;  %s4103_s10 = smov %s4090_s15 }
0x2e68   :  { %30 = sbr.rel (!%p3922_p5) target bundleno = 24 (0x18), region = 170 }
0x2e69   : > { %s4104_s14 = smov %s4094_s26 }
0x2e6a   : > { %s4105_s15 = smov %s4095_s24 }
0x2e6f   :  { %2044 = vsyncpa [#allocation5], 1 }
0x2e70   :  { %2046 = vsyncpa [#allocation5 + $0x1], 1 }
0x2e71   :  { %2047 = vsyncpa [#allocation8], 1 }
0x2e72   :  { %2049 = vsyncpa [#allocation8 + $0x1], 1 }
0x2e73   :  { %2050 = vsyncpa [#allocation6], 1 }
0x2e74   :  { %2052 = vsyncpa [#allocation6 + $0x1], 1 }
0x2e75   :  { %2053 = vsyncpa [#allocation12], 1 }
0x2e76   :  { %2055 = vsyncpa [#allocation12 + $0x1], 1 }

</bundles_post_ra>
